<compile_context>
chip_gen: v7x
topology: tpu7x:2x2x1
jax: 0.10.0
libtpu: 0.0.40
codegen_flags: <defaults>
</compile_context>

<pallas_src>
import functools
import math

import jax
import jax.numpy as jnp
from jax.experimental import pallas as pl
from jax.experimental.pallas import tpu as pltpu

# ----------------------------- tiny config ---------------------------------
VOCAB = 256          # config.vocab_size
SEQ_LEN_MAX = 16     # config.sequence_length
N_EMBD = 32          # config.n_embd
N_HEAD = 4           # config.n_head
N_LAYER = 2          # config.n_layer
INIT_STD = 0.02      # config.init_std
LN_EPS = 1e-5


def _layernorm(x, w, b):
    """x: (..., C), w/b: (1, C).  Matches F.layer_norm(..., eps=1e-5)."""
    mu = jnp.mean(x, axis=-1, keepdims=True)
    xc = x - mu
    var = jnp.mean(xc * xc, axis=-1, keepdims=True)
    return xc * jax.lax.rsqrt(var + LN_EPS) * w + b


def _gelu(x):
    # TODO(synk): PyTorch nn.GELU() uses the exact erf form; tanh approximation used
    # here because erf has no direct Mosaic lowering (max deviation ~1e-3).
    return 0.5 * x * (1.0 + jnp.tanh(0.7978845608028654 * (x + 0.044715 * x * x * x)))


# ----------------------------- fused Pallas kernel --------------------------
def gpt_fused_kernel(idx_ref, wte_ref, wpe_ref,
                     ln1w_ref, ln1b_ref, wqkv_ref, bqkv_ref,
                     wo_ref, bo_ref, ln2w_ref, ln2b_ref,
                     wfc_ref, bfc_ref, wpr_ref, bpr_ref,
                     lnfw_ref, lnfb_ref,
                     logits_ref, *, n_head, n_layer, batch, seqlen):
    B, T = batch, seqlen
    V, C = wte_ref.shape
    dh = C // n_head
    scale = 1.0 / math.sqrt(dh)

    # ---- token + position embedding (exact one-hot matmul gather) ----
    ids = idx_ref[...]                                            # (B*T, 1) int32
    vocab_iota = jax.lax.broadcasted_iota(jnp.int32, (B * T, V), 1)
    onehot = jnp.where(vocab_iota == ids, jnp.float32(1.0), jnp.float32(0.0))
    tok = jnp.dot(onehot, wte_ref[...],
                  preferred_element_type=jnp.float32)             # (BT, C)
    pos = wpe_ref[0:T, :]                                         # (T, C) static slice
    x2 = (tok.reshape(B, T, C) + pos[None, :, :]).reshape(B * T, C)

    # causal mask (shared across layers / heads)
    qi = jax.lax.broadcasted_iota(jnp.int32, (T, T), 0)
    ki = jax.lax.broadcasted_iota(jnp.int32, (T, T), 1)
    causal = qi >= ki                                             # (T, T)

    for li in range(n_layer):                                     # static unroll
        # ---- attention branch ----
        h = _layernorm(x2, ln1w_ref[li], ln1b_ref[li])                          # (BT, C)
        qkv = jnp.dot(h, wqkv_ref[li],
                      preferred_element_type=jnp.float32) + bqkv_ref[li]        # (BT, 3C)
        qkv3 = qkv.reshape(B, T, 3 * C)

        # stack all heads onto the leading batch axis -> one batched attention
        q = jnp.concatenate(
            [qkv3[:, :, hh * dh:(hh + 1) * dh] for hh in range(n_head)], axis=0)          # (HB,T,dh)
        k = jnp.concatenate(
            [qkv3[:, :, C + hh * dh:C + (hh + 1) * dh] for hh in range(n_head)], axis=0)
        v = jnp.concatenate(
            [qkv3[:, :, 2 * C + hh * dh:2 * C + (hh + 1) * dh] for hh in range(n_head)], axis=0)

        att = jnp.einsum('bqd,bkd->bqk', q, k,
                         preferred_element_type=jnp.float32) * scale            # (HB,T,T)
        att = jnp.where(causal[None], att, -1e30)
        att = att - jnp.max(att, axis=-1, keepdims=True)
        p = jnp.exp(att)
        # approx=True (EUP vrcp) is the perf choice at scale; exact kept for 1e-4 parity.
        p = p * pl.reciprocal(jnp.sum(p, axis=-1, keepdims=True), approx=False)
        y_bh = jnp.einsum('bqk,bkd->bqd', p, v,
                          preferred_element_type=jnp.float32)                   # (HB,T,dh)

        # reassemble heads onto the channel axis
        y = jnp.concatenate([y_bh[hh * B:(hh + 1) * B] for hh in range(n_head)],
                            axis=-1)                                            # (B,T,C)
        y = y.reshape(B * T, C)
        y = jnp.dot(y, wo_ref[li],
                    preferred_element_type=jnp.float32) + bo_ref[li]
        x2 = x2 + y                                                             # residual 1

        # ---- MLP branch ----
        h2 = _layernorm(x2, ln2w_ref[li], ln2b_ref[li])                         # (BT, C)
        f = jnp.dot(h2, wfc_ref[li],
                    preferred_element_type=jnp.float32) + bfc_ref[li]
        f = _gelu(f)
        f = jnp.dot(f, wpr_ref[li],
                    preferred_element_type=jnp.float32) + bpr_ref[li]
        x2 = x2 + f                                                             # residual 2

    # ---- final LN + tied lm_head on the LAST token only ----
    last = x2.reshape(B, T, C)[:, T - 1, :]                                     # (B, C)
    last = _layernorm(last, lnfw_ref[...], lnfb_ref[...])
    # logits = last @ wte.T  (NT matmul; no transposed copy materialized)
    logits = jax.lax.dot_general(last, wte_ref[...],
                                 dimension_numbers=(((1,), (1,)), ((), ())),
                                 preferred_element_type=jnp.float32)            # (B, V)
    logits_ref[...] = logits                                                    # lane-dense (V=256)


# ----------------------------- wrapper ---------------------------------------
_VMEM = pl.BlockSpec(memory_space=pltpu.MemorySpace.VMEM)


@jax.jit
def gpt_forward(params, idx):
    """Equivalent of GPTBase.forward(idx, targets=None, get_logits=True)['logits']."""
    B, T = idx.shape
    assert T <= SEQ_LEN_MAX, \
        f"Cannot forward sequence of length {T}, block size is only {SEQ_LEN_MAX}"
    kernel = functools.partial(gpt_fused_kernel, n_head=N_HEAD, n_layer=N_LAYER,
                               batch=B, seqlen=T)
    logits = pl.pallas_call(
        kernel,
        out_shape=jax.ShapeDtypeStruct((B, VOCAB), jnp.float32),
        in_specs=[_VMEM] * 17,
        out_specs=_VMEM,
    )(idx.reshape(B * T, 1).astype(jnp.int32),
      params["wte"], params["wpe"],
      params["ln1_w"], params["ln1_b"], params["w_qkv"], params["b_qkv"],
      params["w_attn_proj"], params["b_attn_proj"],
      params["ln2_w"], params["ln2_b"],
      params["w_fc"], params["b_fc"], params["w_mlp_proj"], params["b_mlp_proj"],
      params["lnf_w"], params["lnf_b"])
    return logits[:, None, :]                                                   # (B, 1, V)


# ----------------------------- reference (pure JAX) --------------------------
def ref_forward(params, idx):
    B, T = idx.shape
    C = N_EMBD
    dh = C // N_HEAD
    x = jnp.take(params["wte"], idx, axis=0) + params["wpe"][:T][None]
    causal = jnp.tril(jnp.ones((T, T), bool))
    for li in range(N_LAYER):
        x2 = x.reshape(B * T, C)
        h = _layernorm(x2, params["ln1_w"][li], params["ln1_b"][li])
        qkv = (h @ params["w_qkv"][li] + params["b_qkv"][li]).reshape(B, T, 3 * C)
        heads = []
        for hh in range(N_HEAD):
            q = qkv[:, :, hh * dh:(hh + 1) * dh]
            k = qkv[:, :, C + hh * dh:C + (hh + 1) * dh]
            v = qkv[:, :, 2 * C + hh * dh:2 * C + (hh + 1) * dh]
            att = jnp.einsum('bqd,bkd->bqk', q, k) / math.sqrt(dh)
            att = jnp.where(causal[None], att, -1e30)
            att = jax.nn.softmax(att, axis=-1)
            heads.append(jnp.einsum('bqk,bkd->bqd', att, v))
        y = jnp.concatenate(heads, axis=-1).reshape(B * T, C)
        x2 = x2 + (y @ params["w_attn_proj"][li] + params["b_attn_proj"][li])
        h2 = _layernorm(x2, params["ln2_w"][li], params["ln2_b"][li])
        f = _gelu(h2 @ params["w_fc"][li] + params["b_fc"][li])
        x2 = x2 + (f @ params["w_mlp_proj"][li] + params["b_mlp_proj"][li])
        x = x2.reshape(B, T, C)
    last = _layernorm(x[:, T - 1, :], params["lnf_w"], params["lnf_b"])
    return (last @ params["wte"].T)[:, None, :]


# ----------------------------- params (layer-stacked) ------------------------
def init_params(key):
    C = N_EMBD
    L = N_LAYER
    std = INIT_STD
    std_proj = INIT_STD / math.sqrt(2 * N_LAYER)   # c_proj.weight special init
    ks = jax.random.split(key, 6)
    return {
        "wte": std * jax.random.normal(ks[0], (VOCAB, C), jnp.float32),   # tied lm_head
        "wpe": std * jax.random.normal(ks[1], (SEQ_LEN_MAX, C), jnp.float32),
        "lnf_w": jnp.ones((1, C), jnp.float32),
        "lnf_b": jnp.zeros((1, C), jnp.float32),
        # per-layer weights stacked on a leading layer axis
        "ln1_w": jnp.ones((L, 1, C), jnp.float32),
        "ln1_b": jnp.zeros((L, 1, C), jnp.float32),
        "w_qkv": std * jax.random.normal(ks[2], (L, C, 3 * C), jnp.float32),
        "b_qkv": jnp.zeros((L, 1, 3 * C), jnp.float32),
        "w_attn_proj": std_proj * jax.random.normal(ks[3], (L, C, C), jnp.float32),
        "b_attn_proj": jnp.zeros((L, 1, C), jnp.float32),
        "ln2_w": jnp.ones((L, 1, C), jnp.float32),
        "ln2_b": jnp.zeros((L, 1, C), jnp.float32),
        "w_fc": std * jax.random.normal(ks[4], (L, C, 4 * C), jnp.float32),
        "b_fc": jnp.zeros((L, 1, 4 * C), jnp.float32),
        "w_mlp_proj": std_proj * jax.random.normal(ks[5], (L, 4 * C, C), jnp.float32),
        "b_mlp_proj": jnp.zeros((L, 1, C), jnp.float32),
    }


# ----------------------------- main ------------------------------------------
if __name__ == "__main__":
    root = jax.random.PRNGKey(0)
    k_params, k_idx = jax.random.split(root)
    params = init_params(k_params)

    B, T = 2, 8
    idx = jax.random.randint(k_idx, (B, T), 0, VOCAB, dtype=jnp.int32)

    logits = gpt_forward(params, idx)
    logits = jax.block_until_ready(logits)
    assert logits.shape == (B, 1, VOCAB), logits.shape

    ref = jax.block_until_ready(ref_forward(params, idx))
    assert jnp.allclose(logits, ref, atol=1e-4, rtol=1e-4), \
        f"max abs diff {jnp.max(jnp.abs(logits - ref))}"

    print("KERNEL_OK")
</pallas_src>

<mosaic_0001>
module attributes {stable_mosaic.version = 11 : i64} {
  func.func @gpt_fused_kernel(%arg0: memref<16x1xi32, #tpu.memory_space<vmem>>, %arg1: memref<256x32xf32, #tpu.memory_space<vmem>>, %arg2: memref<16x32xf32, #tpu.memory_space<vmem>>, %arg3: memref<2x1x32xf32, #tpu.memory_space<vmem>>, %arg4: memref<2x1x32xf32, #tpu.memory_space<vmem>>, %arg5: memref<2x32x96xf32, #tpu.memory_space<vmem>>, %arg6: memref<2x1x96xf32, #tpu.memory_space<vmem>>, %arg7: memref<2x32x32xf32, #tpu.memory_space<vmem>>, %arg8: memref<2x1x32xf32, #tpu.memory_space<vmem>>, %arg9: memref<2x1x32xf32, #tpu.memory_space<vmem>>, %arg10: memref<2x1x32xf32, #tpu.memory_space<vmem>>, %arg11: memref<2x32x128xf32, #tpu.memory_space<vmem>>, %arg12: memref<2x1x128xf32, #tpu.memory_space<vmem>>, %arg13: memref<2x128x32xf32, #tpu.memory_space<vmem>>, %arg14: memref<2x1x32xf32, #tpu.memory_space<vmem>>, %arg15: memref<1x32xf32, #tpu.memory_space<vmem>>, %arg16: memref<1x32xf32, #tpu.memory_space<vmem>>, %arg17: memref<2x256xf32, #tpu.memory_space<vmem>>) attributes {dimension_semantics = [], scalar_prefetch = 0 : i64, scratch_operands = 0 : i64, tpu.core_type = #tpu.core_type<tc>} {
    %c0 = arith.constant 0 : index
    %c0_0 = arith.constant 0 : index
    %0 = vector.load %arg0[%c0, %c0_0] : memref<16x1xi32, #tpu.memory_space<vmem>>, vector<16x1xi32>
    %1 = tpu.iota {dimensions = array<i32: 1>} : vector<16x256xi32>
    %2 = vector.broadcast %0 : vector<16x1xi32> to vector<16x256xi32>
    %3 = arith.cmpi eq, %1, %2 : vector<16x256xi32>
    %cst = arith.constant 1.000000e+00 : f32
    %cst_1 = arith.constant 0.000000e+00 : f32
    %4 = vector.broadcast %cst : f32 to vector<16x256xf32>
    %5 = vector.broadcast %cst_1 : f32 to vector<16x256xf32>
    %6 = arith.select %3, %4, %5 : vector<16x256xi1>, vector<16x256xf32>
    %c0_2 = arith.constant 0 : index
    %c0_3 = arith.constant 0 : index
    %7 = vector.load %arg1[%c0_2, %c0_3] : memref<256x32xf32, #tpu.memory_space<vmem>>, vector<256x32xf32>
    %cst_4 = arith.constant dense<0.000000e+00> : vector<16x32xf32>
    %8 = tpu.matmul %6, %7, %cst_4 {dimension_numbers = #tpu.dot_dimension_numbers<[1], [0], [0], [1], [0, 0, 1, 1], [], []>} : vector<16x256xf32>, vector<256x32xf32>, vector<16x32xf32> -> vector<16x32xf32>
    %c0_5 = arith.constant 0 : index
    %c0_6 = arith.constant 0 : index
    %9 = vector.load %arg2[%c0_5, %c0_6] : memref<16x32xf32, #tpu.memory_space<vmem>>, vector<8x32xf32>
    %10 = vector.shape_cast %8 : vector<16x32xf32> to vector<2x8x32xf32>
    %11 = vector.shape_cast %9 : vector<8x32xf32> to vector<1x8x32xf32>
    %12 = vector.broadcast %11 : vector<1x8x32xf32> to vector<2x8x32xf32>
    %13 = arith.addf %10, %12 : vector<2x8x32xf32>
    %14 = vector.shape_cast %13 : vector<2x8x32xf32> to vector<16x32xf32>
    %15 = tpu.iota {dimensions = array<i32: 0>} : vector<8x8xi32>
    %16 = tpu.iota {dimensions = array<i32: 1>} : vector<8x8xi32>
    %17 = arith.cmpi sge, %15, %16 : vector<8x8xi32>
    %c0_7 = arith.constant 0 : index
    %c0_8 = arith.constant 0 : index
    %c0_9 = arith.constant 0 : index
    %18 = vector.load %arg3[%c0_7, %c0_8, %c0_9] : memref<2x1x32xf32, #tpu.memory_space<vmem>>, vector<1x1x32xf32>
    %19 = vector.shape_cast %18 : vector<1x1x32xf32> to vector<1x32xf32>
    %c0_10 = arith.constant 0 : index
    %c0_11 = arith.constant 0 : index
    %c0_12 = arith.constant 0 : index
    %20 = vector.load %arg4[%c0_10, %c0_11, %c0_12] : memref<2x1x32xf32, #tpu.memory_space<vmem>>, vector<1x1x32xf32>
    %21 = vector.shape_cast %20 : vector<1x1x32xf32> to vector<1x32xf32>
    %cst_13 = arith.constant dense<0.000000e+00> : vector<16xf32>
    %22 = vector.multi_reduction <add>, %14, %cst_13 [1] : vector<16x32xf32> to vector<16xf32>
    %23 = vector.shape_cast %22 : vector<16xf32> to vector<16x1xf32>
    %cst_14 = arith.constant 3.200000e+01 : f32
    %24 = vector.broadcast %cst_14 : f32 to vector<16x1xf32>
    %25 = arith.divf %23, %24 : vector<16x1xf32>
    %26 = vector.broadcast %25 : vector<16x1xf32> to vector<16x32xf32>
    %27 = arith.subf %14, %26 : vector<16x32xf32>
    %28 = arith.mulf %27, %27 : vector<16x32xf32>
    %cst_15 = arith.constant dense<0.000000e+00> : vector<16xf32>
    %29 = vector.multi_reduction <add>, %28, %cst_15 [1] : vector<16x32xf32> to vector<16xf32>
    %30 = vector.shape_cast %29 : vector<16xf32> to vector<16x1xf32>
    %cst_16 = arith.constant 3.200000e+01 : f32
    %31 = vector.broadcast %cst_16 : f32 to vector<16x1xf32>
    %32 = arith.divf %30, %31 : vector<16x1xf32>
    %cst_17 = arith.constant 9.99999974E-6 : f32
    %33 = vector.broadcast %cst_17 : f32 to vector<16x1xf32>
    %34 = arith.addf %32, %33 : vector<16x1xf32>
    %35 = math.rsqrt %34 : vector<16x1xf32>
    %36 = vector.broadcast %35 : vector<16x1xf32> to vector<16x32xf32>
    %37 = arith.mulf %27, %36 : vector<16x32xf32>
    %38 = vector.broadcast %19 : vector<1x32xf32> to vector<16x32xf32>
    %39 = arith.mulf %37, %38 : vector<16x32xf32>
    %40 = vector.broadcast %21 : vector<1x32xf32> to vector<16x32xf32>
    %41 = arith.addf %39, %40 : vector<16x32xf32>
    %c0_18 = arith.constant 0 : index
    %c0_19 = arith.constant 0 : index
    %c0_20 = arith.constant 0 : index
    %42 = vector.load %arg5[%c0_18, %c0_19, %c0_20] : memref<2x32x96xf32, #tpu.memory_space<vmem>>, vector<1x32x96xf32>
    %43 = vector.shape_cast %42 : vector<1x32x96xf32> to vector<32x96xf32>
    %cst_21 = arith.constant dense<0.000000e+00> : vector<16x96xf32>
    %44 = tpu.matmul %41, %43, %cst_21 {dimension_numbers = #tpu.dot_dimension_numbers<[1], [0], [0], [1], [0, 0, 1, 1], [], []>} : vector<16x32xf32>, vector<32x96xf32>, vector<16x96xf32> -> vector<16x96xf32>
    %c0_22 = arith.constant 0 : index
    %c0_23 = arith.constant 0 : index
    %c0_24 = arith.constant 0 : index
    %45 = vector.load %arg6[%c0_22, %c0_23, %c0_24] : memref<2x1x96xf32, #tpu.memory_space<vmem>>, vector<1x1x96xf32>
    %46 = vector.shape_cast %45 : vector<1x1x96xf32> to vector<1x96xf32>
    %47 = vector.broadcast %46 : vector<1x96xf32> to vector<16x96xf32>
    %48 = arith.addf %44, %47 : vector<16x96xf32>
    %49 = vector.shape_cast %48 : vector<16x96xf32> to vector<2x8x96xf32>
    %50 = vector.extract_strided_slice %49 {offsets = [0, 0, 0], sizes = [2, 8, 8], strides = [1, 1, 1]} : vector<2x8x96xf32> to vector<2x8x8xf32>
    %51 = vector.extract_strided_slice %49 {offsets = [0, 0, 8], sizes = [2, 8, 8], strides = [1, 1, 1]} : vector<2x8x96xf32> to vector<2x8x8xf32>
    %52 = vector.extract_strided_slice %49 {offsets = [0, 0, 16], sizes = [2, 8, 8], strides = [1, 1, 1]} : vector<2x8x96xf32> to vector<2x8x8xf32>
    %53 = vector.extract_strided_slice %49 {offsets = [0, 0, 24], sizes = [2, 8, 8], strides = [1, 1, 1]} : vector<2x8x96xf32> to vector<2x8x8xf32>
    %54 = tpu.concatenate %50, %51, %52, %53 in 0 : vector<2x8x8xf32>, vector<2x8x8xf32>, vector<2x8x8xf32>, vector<2x8x8xf32> -> vector<8x8x8xf32>
    %55 = vector.extract_strided_slice %49 {offsets = [0, 0, 32], sizes = [2, 8, 8], strides = [1, 1, 1]} : vector<2x8x96xf32> to vector<2x8x8xf32>
    %56 = vector.extract_strided_slice %49 {offsets = [0, 0, 40], sizes = [2, 8, 8], strides = [1, 1, 1]} : vector<2x8x96xf32> to vector<2x8x8xf32>
    %57 = vector.extract_strided_slice %49 {offsets = [0, 0, 48], sizes = [2, 8, 8], strides = [1, 1, 1]} : vector<2x8x96xf32> to vector<2x8x8xf32>
    %58 = vector.extract_strided_slice %49 {offsets = [0, 0, 56], sizes = [2, 8, 8], strides = [1, 1, 1]} : vector<2x8x96xf32> to vector<2x8x8xf32>
    %59 = tpu.concatenate %55, %56, %57, %58 in 0 : vector<2x8x8xf32>, vector<2x8x8xf32>, vector<2x8x8xf32>, vector<2x8x8xf32> -> vector<8x8x8xf32>
    %60 = vector.extract_strided_slice %49 {offsets = [0, 0, 64], sizes = [2, 8, 8], strides = [1, 1, 1]} : vector<2x8x96xf32> to vector<2x8x8xf32>
    %61 = vector.extract_strided_slice %49 {offsets = [0, 0, 72], sizes = [2, 8, 8], strides = [1, 1, 1]} : vector<2x8x96xf32> to vector<2x8x8xf32>
    %62 = vector.extract_strided_slice %49 {offsets = [0, 0, 80], sizes = [2, 8, 8], strides = [1, 1, 1]} : vector<2x8x96xf32> to vector<2x8x8xf32>
    %63 = vector.extract_strided_slice %49 {offsets = [0, 0, 88], sizes = [2, 8, 8], strides = [1, 1, 1]} : vector<2x8x96xf32> to vector<2x8x8xf32>
    %64 = tpu.concatenate %60, %61, %62, %63 in 0 : vector<2x8x8xf32>, vector<2x8x8xf32>, vector<2x8x8xf32>, vector<2x8x8xf32> -> vector<8x8x8xf32>
    "tpu.trace_start"() <{level = 10 : i32, message = "bqd,bkd->bqk"}> : () -> ()
    %cst_25 = arith.constant dense<0.000000e+00> : vector<8x8x8xf32>
    %65 = tpu.matmul %54, %59, %cst_25 {dimension_numbers = #tpu.dot_dimension_numbers<[2], [2], [1], [1], [0, 0, 0, 1, 1, 1], [0], [0]>} : vector<8x8x8xf32>, vector<8x8x8xf32>, vector<8x8x8xf32> -> vector<8x8x8xf32>
    "tpu.trace_stop"() : () -> ()
    %cst_26 = arith.constant 0.353553385 : f32
    %66 = vector.broadcast %cst_26 : f32 to vector<8x8x8xf32>
    %67 = arith.mulf %65, %66 : vector<8x8x8xf32>
    %68 = vector.shape_cast %17 : vector<8x8xi1> to vector<1x8x8xi1>
    %cst_27 = arith.constant -1.000000e+30 : f32
    %69 = vector.shape_cast %68 : vector<1x8x8xi1> to vector<1x8x8xi1>
    %70 = vector.broadcast %69 : vector<1x8x8xi1> to vector<8x8x8xi1>
    %71 = vector.broadcast %cst_27 : f32 to vector<8x8x8xf32>
    %72 = arith.select %70, %67, %71 : vector<8x8x8xi1>, vector<8x8x8xf32>
    %cst_28 = arith.constant dense<0xFF800000> : vector<8x8xf32>
    %73 = vector.multi_reduction <maximumf>, %72, %cst_28 [2] : vector<8x8x8xf32> to vector<8x8xf32>
    %74 = vector.shape_cast %73 : vector<8x8xf32> to vector<8x8x1xf32>
    %75 = vector.broadcast %74 : vector<8x8x1xf32> to vector<8x8x8xf32>
    %76 = arith.subf %72, %75 : vector<8x8x8xf32>
    %77 = math.exp %76 : vector<8x8x8xf32>
    %cst_29 = arith.constant dense<0.000000e+00> : vector<8x8xf32>
    %78 = vector.multi_reduction <add>, %77, %cst_29 [2] : vector<8x8x8xf32> to vector<8x8xf32>
    %79 = vector.shape_cast %78 : vector<8x8xf32> to vector<8x8x1xf32>
    %80 = tpu.reciprocal %79 : vector<8x8x1xf32> -> vector<8x8x1xf32>
    %81 = vector.broadcast %80 : vector<8x8x1xf32> to vector<8x8x8xf32>
    %82 = arith.mulf %77, %81 : vector<8x8x8xf32>
    "tpu.trace_start"() <{level = 10 : i32, message = "bqk,bkd->bqd"}> : () -> ()
    %cst_30 = arith.constant dense<0.000000e+00> : vector<8x8x8xf32>
    %83 = tpu.matmul %82, %64, %cst_30 {dimension_numbers = #tpu.dot_dimension_numbers<[2], [1], [1], [2], [0, 0, 0, 1, 1, 2], [0], [0]>} : vector<8x8x8xf32>, vector<8x8x8xf32>, vector<8x8x8xf32> -> vector<8x8x8xf32>
    "tpu.trace_stop"() : () -> ()
    %84 = vector.extract_strided_slice %83 {offsets = [0, 0, 0], sizes = [2, 8, 8], strides = [1, 1, 1]} : vector<8x8x8xf32> to vector<2x8x8xf32>
    %85 = vector.extract_strided_slice %83 {offsets = [2, 0, 0], sizes = [2, 8, 8], strides = [1, 1, 1]} : vector<8x8x8xf32> to vector<2x8x8xf32>
    %86 = vector.extract_strided_slice %83 {offsets = [4, 0, 0], sizes = [2, 8, 8], strides = [1, 1, 1]} : vector<8x8x8xf32> to vector<2x8x8xf32>
    %87 = vector.extract_strided_slice %83 {offsets = [6, 0, 0], sizes = [2, 8, 8], strides = [1, 1, 1]} : vector<8x8x8xf32> to vector<2x8x8xf32>
    %88 = tpu.concatenate %84, %85, %86, %87 in 2 : vector<2x8x8xf32>, vector<2x8x8xf32>, vector<2x8x8xf32>, vector<2x8x8xf32> -> vector<2x8x32xf32>
    %89 = vector.shape_cast %88 : vector<2x8x32xf32> to vector<16x32xf32>
    %c0_31 = arith.constant 0 : index
    %c0_32 = arith.constant 0 : index
    %c0_33 = arith.constant 0 : index
    %90 = vector.load %arg7[%c0_31, %c0_32, %c0_33] : memref<2x32x32xf32, #tpu.memory_space<vmem>>, vector<1x32x32xf32>
    %91 = vector.shape_cast %90 : vector<1x32x32xf32> to vector<32x32xf32>
    %cst_34 = arith.constant dense<0.000000e+00> : vector<16x32xf32>
    %92 = tpu.matmul %89, %91, %cst_34 {dimension_numbers = #tpu.dot_dimension_numbers<[1], [0], [0], [1], [0, 0, 1, 1], [], []>} : vector<16x32xf32>, vector<32x32xf32>, vector<16x32xf32> -> vector<16x32xf32>
    %c0_35 = arith.constant 0 : index
    %c0_36 = arith.constant 0 : index
    %c0_37 = arith.constant 0 : index
    %93 = vector.load %arg8[%c0_35, %c0_36, %c0_37] : memref<2x1x32xf32, #tpu.memory_space<vmem>>, vector<1x1x32xf32>
    %94 = vector.shape_cast %93 : vector<1x1x32xf32> to vector<1x32xf32>
    %95 = vector.broadcast %94 : vector<1x32xf32> to vector<16x32xf32>
    %96 = arith.addf %92, %95 : vector<16x32xf32>
    %97 = arith.addf %14, %96 : vector<16x32xf32>
    %c0_38 = arith.constant 0 : index
    %c0_39 = arith.constant 0 : index
    %c0_40 = arith.constant 0 : index
    %98 = vector.load %arg9[%c0_38, %c0_39, %c0_40] : memref<2x1x32xf32, #tpu.memory_space<vmem>>, vector<1x1x32xf32>
    %99 = vector.shape_cast %98 : vector<1x1x32xf32> to vector<1x32xf32>
    %c0_41 = arith.constant 0 : index
    %c0_42 = arith.constant 0 : index
    %c0_43 = arith.constant 0 : index
    %100 = vector.load %arg10[%c0_41, %c0_42, %c0_43] : memref<2x1x32xf32, #tpu.memory_space<vmem>>, vector<1x1x32xf32>
    %101 = vector.shape_cast %100 : vector<1x1x32xf32> to vector<1x32xf32>
    %cst_44 = arith.constant dense<0.000000e+00> : vector<16xf32>
    %102 = vector.multi_reduction <add>, %97, %cst_44 [1] : vector<16x32xf32> to vector<16xf32>
    %103 = vector.shape_cast %102 : vector<16xf32> to vector<16x1xf32>
    %cst_45 = arith.constant 3.200000e+01 : f32
    %104 = vector.broadcast %cst_45 : f32 to vector<16x1xf32>
    %105 = arith.divf %103, %104 : vector<16x1xf32>
    %106 = vector.broadcast %105 : vector<16x1xf32> to vector<16x32xf32>
    %107 = arith.subf %97, %106 : vector<16x32xf32>
    %108 = arith.mulf %107, %107 : vector<16x32xf32>
    %cst_46 = arith.constant dense<0.000000e+00> : vector<16xf32>
    %109 = vector.multi_reduction <add>, %108, %cst_46 [1] : vector<16x32xf32> to vector<16xf32>
    %110 = vector.shape_cast %109 : vector<16xf32> to vector<16x1xf32>
    %cst_47 = arith.constant 3.200000e+01 : f32
    %111 = vector.broadcast %cst_47 : f32 to vector<16x1xf32>
    %112 = arith.divf %110, %111 : vector<16x1xf32>
    %cst_48 = arith.constant 9.99999974E-6 : f32
    %113 = vector.broadcast %cst_48 : f32 to vector<16x1xf32>
    %114 = arith.addf %112, %113 : vector<16x1xf32>
    %115 = math.rsqrt %114 : vector<16x1xf32>
    %116 = vector.broadcast %115 : vector<16x1xf32> to vector<16x32xf32>
    %117 = arith.mulf %107, %116 : vector<16x32xf32>
    %118 = vector.broadcast %99 : vector<1x32xf32> to vector<16x32xf32>
    %119 = arith.mulf %117, %118 : vector<16x32xf32>
    %120 = vector.broadcast %101 : vector<1x32xf32> to vector<16x32xf32>
    %121 = arith.addf %119, %120 : vector<16x32xf32>
    %c0_49 = arith.constant 0 : index
    %c0_50 = arith.constant 0 : index
    %c0_51 = arith.constant 0 : index
    %122 = vector.load %arg11[%c0_49, %c0_50, %c0_51] : memref<2x32x128xf32, #tpu.memory_space<vmem>>, vector<1x32x128xf32>
    %123 = vector.shape_cast %122 : vector<1x32x128xf32> to vector<32x128xf32>
    %cst_52 = arith.constant dense<0.000000e+00> : vector<16x128xf32>
    %124 = tpu.matmul %121, %123, %cst_52 {dimension_numbers = #tpu.dot_dimension_numbers<[1], [0], [0], [1], [0, 0, 1, 1], [], []>} : vector<16x32xf32>, vector<32x128xf32>, vector<16x128xf32> -> vector<16x128xf32>
    %c0_53 = arith.constant 0 : index
    %c0_54 = arith.constant 0 : index
    %c0_55 = arith.constant 0 : index
    %125 = vector.load %arg12[%c0_53, %c0_54, %c0_55] : memref<2x1x128xf32, #tpu.memory_space<vmem>>, vector<1x1x128xf32>
    %126 = vector.shape_cast %125 : vector<1x1x128xf32> to vector<1x128xf32>
    %127 = vector.broadcast %126 : vector<1x128xf32> to vector<16x128xf32>
    %128 = arith.addf %124, %127 : vector<16x128xf32>
    %cst_56 = arith.constant 5.000000e-01 : f32
    %129 = vector.broadcast %cst_56 : f32 to vector<16x128xf32>
    %130 = arith.mulf %129, %128 : vector<16x128xf32>
    %cst_57 = arith.constant 4.471500e-02 : f32
    %131 = vector.broadcast %cst_57 : f32 to vector<16x128xf32>
    %132 = arith.mulf %131, %128 : vector<16x128xf32>
    %133 = arith.mulf %132, %128 : vector<16x128xf32>
    %134 = arith.mulf %133, %128 : vector<16x128xf32>
    %135 = arith.addf %128, %134 : vector<16x128xf32>
    %cst_58 = arith.constant 0.797884583 : f32
    %136 = vector.broadcast %cst_58 : f32 to vector<16x128xf32>
    %137 = arith.mulf %136, %135 : vector<16x128xf32>
    %138 = math.tanh %137 : vector<16x128xf32>
    %cst_59 = arith.constant 1.000000e+00 : f32
    %139 = vector.broadcast %cst_59 : f32 to vector<16x128xf32>
    %140 = arith.addf %139, %138 : vector<16x128xf32>
    %141 = arith.mulf %130, %140 : vector<16x128xf32>
    %c0_60 = arith.constant 0 : index
    %c0_61 = arith.constant 0 : index
    %c0_62 = arith.constant 0 : index
    %142 = vector.load %arg13[%c0_60, %c0_61, %c0_62] : memref<2x128x32xf32, #tpu.memory_space<vmem>>, vector<1x128x32xf32>
    %143 = vector.shape_cast %142 : vector<1x128x32xf32> to vector<128x32xf32>
    %cst_63 = arith.constant dense<0.000000e+00> : vector<16x32xf32>
    %144 = tpu.matmul %141, %143, %cst_63 {dimension_numbers = #tpu.dot_dimension_numbers<[1], [0], [0], [1], [0, 0, 1, 1], [], []>} : vector<16x128xf32>, vector<128x32xf32>, vector<16x32xf32> -> vector<16x32xf32>
    %c0_64 = arith.constant 0 : index
    %c0_65 = arith.constant 0 : index
    %c0_66 = arith.constant 0 : index
    %145 = vector.load %arg14[%c0_64, %c0_65, %c0_66] : memref<2x1x32xf32, #tpu.memory_space<vmem>>, vector<1x1x32xf32>
    %146 = vector.shape_cast %145 : vector<1x1x32xf32> to vector<1x32xf32>
    %147 = vector.broadcast %146 : vector<1x32xf32> to vector<16x32xf32>
    %148 = arith.addf %144, %147 : vector<16x32xf32>
    %149 = arith.addf %97, %148 : vector<16x32xf32>
    %c1 = arith.constant 1 : index
    %c0_67 = arith.constant 0 : index
    %c0_68 = arith.constant 0 : index
    %150 = vector.load %arg3[%c1, %c0_67, %c0_68] : memref<2x1x32xf32, #tpu.memory_space<vmem>>, vector<1x1x32xf32>
    %151 = vector.shape_cast %150 : vector<1x1x32xf32> to vector<1x32xf32>
    %c1_69 = arith.constant 1 : index
    %c0_70 = arith.constant 0 : index
    %c0_71 = arith.constant 0 : index
    %152 = vector.load %arg4[%c1_69, %c0_70, %c0_71] : memref<2x1x32xf32, #tpu.memory_space<vmem>>, vector<1x1x32xf32>
    %153 = vector.shape_cast %152 : vector<1x1x32xf32> to vector<1x32xf32>
    %cst_72 = arith.constant dense<0.000000e+00> : vector<16xf32>
    %154 = vector.multi_reduction <add>, %149, %cst_72 [1] : vector<16x32xf32> to vector<16xf32>
    %155 = vector.shape_cast %154 : vector<16xf32> to vector<16x1xf32>
    %cst_73 = arith.constant 3.200000e+01 : f32
    %156 = vector.broadcast %cst_73 : f32 to vector<16x1xf32>
    %157 = arith.divf %155, %156 : vector<16x1xf32>
    %158 = vector.broadcast %157 : vector<16x1xf32> to vector<16x32xf32>
    %159 = arith.subf %149, %158 : vector<16x32xf32>
    %160 = arith.mulf %159, %159 : vector<16x32xf32>
    %cst_74 = arith.constant dense<0.000000e+00> : vector<16xf32>
    %161 = vector.multi_reduction <add>, %160, %cst_74 [1] : vector<16x32xf32> to vector<16xf32>
    %162 = vector.shape_cast %161 : vector<16xf32> to vector<16x1xf32>
    %cst_75 = arith.constant 3.200000e+01 : f32
    %163 = vector.broadcast %cst_75 : f32 to vector<16x1xf32>
    %164 = arith.divf %162, %163 : vector<16x1xf32>
    %cst_76 = arith.constant 9.99999974E-6 : f32
    %165 = vector.broadcast %cst_76 : f32 to vector<16x1xf32>
    %166 = arith.addf %164, %165 : vector<16x1xf32>
    %167 = math.rsqrt %166 : vector<16x1xf32>
    %168 = vector.broadcast %167 : vector<16x1xf32> to vector<16x32xf32>
    %169 = arith.mulf %159, %168 : vector<16x32xf32>
    %170 = vector.broadcast %151 : vector<1x32xf32> to vector<16x32xf32>
    %171 = arith.mulf %169, %170 : vector<16x32xf32>
    %172 = vector.broadcast %153 : vector<1x32xf32> to vector<16x32xf32>
    %173 = arith.addf %171, %172 : vector<16x32xf32>
    %c1_77 = arith.constant 1 : index
    %c0_78 = arith.constant 0 : index
    %c0_79 = arith.constant 0 : index
    %174 = vector.load %arg5[%c1_77, %c0_78, %c0_79] : memref<2x32x96xf32, #tpu.memory_space<vmem>>, vector<1x32x96xf32>
    %175 = vector.shape_cast %174 : vector<1x32x96xf32> to vector<32x96xf32>
    %cst_80 = arith.constant dense<0.000000e+00> : vector<16x96xf32>
    %176 = tpu.matmul %173, %175, %cst_80 {dimension_numbers = #tpu.dot_dimension_numbers<[1], [0], [0], [1], [0, 0, 1, 1], [], []>} : vector<16x32xf32>, vector<32x96xf32>, vector<16x96xf32> -> vector<16x96xf32>
    %c1_81 = arith.constant 1 : index
    %c0_82 = arith.constant 0 : index
    %c0_83 = arith.constant 0 : index
    %177 = vector.load %arg6[%c1_81, %c0_82, %c0_83] : memref<2x1x96xf32, #tpu.memory_space<vmem>>, vector<1x1x96xf32>
    %178 = vector.shape_cast %177 : vector<1x1x96xf32> to vector<1x96xf32>
    %179 = vector.broadcast %178 : vector<1x96xf32> to vector<16x96xf32>
    %180 = arith.addf %176, %179 : vector<16x96xf32>
    %181 = vector.shape_cast %180 : vector<16x96xf32> to vector<2x8x96xf32>
    %182 = vector.extract_strided_slice %181 {offsets = [0, 0, 0], sizes = [2, 8, 8], strides = [1, 1, 1]} : vector<2x8x96xf32> to vector<2x8x8xf32>
    %183 = vector.extract_strided_slice %181 {offsets = [0, 0, 8], sizes = [2, 8, 8], strides = [1, 1, 1]} : vector<2x8x96xf32> to vector<2x8x8xf32>
    %184 = vector.extract_strided_slice %181 {offsets = [0, 0, 16], sizes = [2, 8, 8], strides = [1, 1, 1]} : vector<2x8x96xf32> to vector<2x8x8xf32>
    %185 = vector.extract_strided_slice %181 {offsets = [0, 0, 24], sizes = [2, 8, 8], strides = [1, 1, 1]} : vector<2x8x96xf32> to vector<2x8x8xf32>
    %186 = tpu.concatenate %182, %183, %184, %185 in 0 : vector<2x8x8xf32>, vector<2x8x8xf32>, vector<2x8x8xf32>, vector<2x8x8xf32> -> vector<8x8x8xf32>
    %187 = vector.extract_strided_slice %181 {offsets = [0, 0, 32], sizes = [2, 8, 8], strides = [1, 1, 1]} : vector<2x8x96xf32> to vector<2x8x8xf32>
    %188 = vector.extract_strided_slice %181 {offsets = [0, 0, 40], sizes = [2, 8, 8], strides = [1, 1, 1]} : vector<2x8x96xf32> to vector<2x8x8xf32>
    %189 = vector.extract_strided_slice %181 {offsets = [0, 0, 48], sizes = [2, 8, 8], strides = [1, 1, 1]} : vector<2x8x96xf32> to vector<2x8x8xf32>
    %190 = vector.extract_strided_slice %181 {offsets = [0, 0, 56], sizes = [2, 8, 8], strides = [1, 1, 1]} : vector<2x8x96xf32> to vector<2x8x8xf32>
    %191 = tpu.concatenate %187, %188, %189, %190 in 0 : vector<2x8x8xf32>, vector<2x8x8xf32>, vector<2x8x8xf32>, vector<2x8x8xf32> -> vector<8x8x8xf32>
    %192 = vector.extract_strided_slice %181 {offsets = [0, 0, 64], sizes = [2, 8, 8], strides = [1, 1, 1]} : vector<2x8x96xf32> to vector<2x8x8xf32>
    %193 = vector.extract_strided_slice %181 {offsets = [0, 0, 72], sizes = [2, 8, 8], strides = [1, 1, 1]} : vector<2x8x96xf32> to vector<2x8x8xf32>
    %194 = vector.extract_strided_slice %181 {offsets = [0, 0, 80], sizes = [2, 8, 8], strides = [1, 1, 1]} : vector<2x8x96xf32> to vector<2x8x8xf32>
    %195 = vector.extract_strided_slice %181 {offsets = [0, 0, 88], sizes = [2, 8, 8], strides = [1, 1, 1]} : vector<2x8x96xf32> to vector<2x8x8xf32>
    %196 = tpu.concatenate %192, %193, %194, %195 in 0 : vector<2x8x8xf32>, vector<2x8x8xf32>, vector<2x8x8xf32>, vector<2x8x8xf32> -> vector<8x8x8xf32>
    "tpu.trace_start"() <{level = 10 : i32, message = "bqd,bkd->bqk"}> : () -> ()
    %cst_84 = arith.constant dense<0.000000e+00> : vector<8x8x8xf32>
    %197 = tpu.matmul %186, %191, %cst_84 {dimension_numbers = #tpu.dot_dimension_numbers<[2], [2], [1], [1], [0, 0, 0, 1, 1, 1], [0], [0]>} : vector<8x8x8xf32>, vector<8x8x8xf32>, vector<8x8x8xf32> -> vector<8x8x8xf32>
    "tpu.trace_stop"() : () -> ()
    %cst_85 = arith.constant 0.353553385 : f32
    %198 = vector.broadcast %cst_85 : f32 to vector<8x8x8xf32>
    %199 = arith.mulf %197, %198 : vector<8x8x8xf32>
    %200 = vector.shape_cast %17 : vector<8x8xi1> to vector<1x8x8xi1>
    %cst_86 = arith.constant -1.000000e+30 : f32
    %201 = vector.shape_cast %200 : vector<1x8x8xi1> to vector<1x8x8xi1>
    %202 = vector.broadcast %201 : vector<1x8x8xi1> to vector<8x8x8xi1>
    %203 = vector.broadcast %cst_86 : f32 to vector<8x8x8xf32>
    %204 = arith.select %202, %199, %203 : vector<8x8x8xi1>, vector<8x8x8xf32>
    %cst_87 = arith.constant dense<0xFF800000> : vector<8x8xf32>
    %205 = vector.multi_reduction <maximumf>, %204, %cst_87 [2] : vector<8x8x8xf32> to vector<8x8xf32>
    %206 = vector.shape_cast %205 : vector<8x8xf32> to vector<8x8x1xf32>
    %207 = vector.broadcast %206 : vector<8x8x1xf32> to vector<8x8x8xf32>
    %208 = arith.subf %204, %207 : vector<8x8x8xf32>
    %209 = math.exp %208 : vector<8x8x8xf32>
    %cst_88 = arith.constant dense<0.000000e+00> : vector<8x8xf32>
    %210 = vector.multi_reduction <add>, %209, %cst_88 [2] : vector<8x8x8xf32> to vector<8x8xf32>
    %211 = vector.shape_cast %210 : vector<8x8xf32> to vector<8x8x1xf32>
    %212 = tpu.reciprocal %211 : vector<8x8x1xf32> -> vector<8x8x1xf32>
    %213 = vector.broadcast %212 : vector<8x8x1xf32> to vector<8x8x8xf32>
    %214 = arith.mulf %209, %213 : vector<8x8x8xf32>
    "tpu.trace_start"() <{level = 10 : i32, message = "bqk,bkd->bqd"}> : () -> ()
    %cst_89 = arith.constant dense<0.000000e+00> : vector<8x8x8xf32>
    %215 = tpu.matmul %214, %196, %cst_89 {dimension_numbers = #tpu.dot_dimension_numbers<[2], [1], [1], [2], [0, 0, 0, 1, 1, 2], [0], [0]>} : vector<8x8x8xf32>, vector<8x8x8xf32>, vector<8x8x8xf32> -> vector<8x8x8xf32>
    "tpu.trace_stop"() : () -> ()
    %216 = vector.extract_strided_slice %215 {offsets = [0, 0, 0], sizes = [2, 8, 8], strides = [1, 1, 1]} : vector<8x8x8xf32> to vector<2x8x8xf32>
    %217 = vector.extract_strided_slice %215 {offsets = [2, 0, 0], sizes = [2, 8, 8], strides = [1, 1, 1]} : vector<8x8x8xf32> to vector<2x8x8xf32>
    %218 = vector.extract_strided_slice %215 {offsets = [4, 0, 0], sizes = [2, 8, 8], strides = [1, 1, 1]} : vector<8x8x8xf32> to vector<2x8x8xf32>
    %219 = vector.extract_strided_slice %215 {offsets = [6, 0, 0], sizes = [2, 8, 8], strides = [1, 1, 1]} : vector<8x8x8xf32> to vector<2x8x8xf32>
    %220 = tpu.concatenate %216, %217, %218, %219 in 2 : vector<2x8x8xf32>, vector<2x8x8xf32>, vector<2x8x8xf32>, vector<2x8x8xf32> -> vector<2x8x32xf32>
    %221 = vector.shape_cast %220 : vector<2x8x32xf32> to vector<16x32xf32>
    %c1_90 = arith.constant 1 : index
    %c0_91 = arith.constant 0 : index
    %c0_92 = arith.constant 0 : index
    %222 = vector.load %arg7[%c1_90, %c0_91, %c0_92] : memref<2x32x32xf32, #tpu.memory_space<vmem>>, vector<1x32x32xf32>
    %223 = vector.shape_cast %222 : vector<1x32x32xf32> to vector<32x32xf32>
    %cst_93 = arith.constant dense<0.000000e+00> : vector<16x32xf32>
    %224 = tpu.matmul %221, %223, %cst_93 {dimension_numbers = #tpu.dot_dimension_numbers<[1], [0], [0], [1], [0, 0, 1, 1], [], []>} : vector<16x32xf32>, vector<32x32xf32>, vector<16x32xf32> -> vector<16x32xf32>
    %c1_94 = arith.constant 1 : index
    %c0_95 = arith.constant 0 : index
    %c0_96 = arith.constant 0 : index
    %225 = vector.load %arg8[%c1_94, %c0_95, %c0_96] : memref<2x1x32xf32, #tpu.memory_space<vmem>>, vector<1x1x32xf32>
    %226 = vector.shape_cast %225 : vector<1x1x32xf32> to vector<1x32xf32>
    %227 = vector.broadcast %226 : vector<1x32xf32> to vector<16x32xf32>
    %228 = arith.addf %224, %227 : vector<16x32xf32>
    %229 = arith.addf %149, %228 : vector<16x32xf32>
    %c1_97 = arith.constant 1 : index
    %c0_98 = arith.constant 0 : index
    %c0_99 = arith.constant 0 : index
    %230 = vector.load %arg9[%c1_97, %c0_98, %c0_99] : memref<2x1x32xf32, #tpu.memory_space<vmem>>, vector<1x1x32xf32>
    %231 = vector.shape_cast %230 : vector<1x1x32xf32> to vector<1x32xf32>
    %c1_100 = arith.constant 1 : index
    %c0_101 = arith.constant 0 : index
    %c0_102 = arith.constant 0 : index
    %232 = vector.load %arg10[%c1_100, %c0_101, %c0_102] : memref<2x1x32xf32, #tpu.memory_space<vmem>>, vector<1x1x32xf32>
    %233 = vector.shape_cast %232 : vector<1x1x32xf32> to vector<1x32xf32>
    %cst_103 = arith.constant dense<0.000000e+00> : vector<16xf32>
    %234 = vector.multi_reduction <add>, %229, %cst_103 [1] : vector<16x32xf32> to vector<16xf32>
    %235 = vector.shape_cast %234 : vector<16xf32> to vector<16x1xf32>
    %cst_104 = arith.constant 3.200000e+01 : f32
    %236 = vector.broadcast %cst_104 : f32 to vector<16x1xf32>
    %237 = arith.divf %235, %236 : vector<16x1xf32>
    %238 = vector.broadcast %237 : vector<16x1xf32> to vector<16x32xf32>
    %239 = arith.subf %229, %238 : vector<16x32xf32>
    %240 = arith.mulf %239, %239 : vector<16x32xf32>
    %cst_105 = arith.constant dense<0.000000e+00> : vector<16xf32>
    %241 = vector.multi_reduction <add>, %240, %cst_105 [1] : vector<16x32xf32> to vector<16xf32>
    %242 = vector.shape_cast %241 : vector<16xf32> to vector<16x1xf32>
    %cst_106 = arith.constant 3.200000e+01 : f32
    %243 = vector.broadcast %cst_106 : f32 to vector<16x1xf32>
    %244 = arith.divf %242, %243 : vector<16x1xf32>
    %cst_107 = arith.constant 9.99999974E-6 : f32
    %245 = vector.broadcast %cst_107 : f32 to vector<16x1xf32>
    %246 = arith.addf %244, %245 : vector<16x1xf32>
    %247 = math.rsqrt %246 : vector<16x1xf32>
    %248 = vector.broadcast %247 : vector<16x1xf32> to vector<16x32xf32>
    %249 = arith.mulf %239, %248 : vector<16x32xf32>
    %250 = vector.broadcast %231 : vector<1x32xf32> to vector<16x32xf32>
    %251 = arith.mulf %249, %250 : vector<16x32xf32>
    %252 = vector.broadcast %233 : vector<1x32xf32> to vector<16x32xf32>
    %253 = arith.addf %251, %252 : vector<16x32xf32>
    %c1_108 = arith.constant 1 : index
    %c0_109 = arith.constant 0 : index
    %c0_110 = arith.constant 0 : index
    %254 = vector.load %arg11[%c1_108, %c0_109, %c0_110] : memref<2x32x128xf32, #tpu.memory_space<vmem>>, vector<1x32x128xf32>
    %255 = vector.shape_cast %254 : vector<1x32x128xf32> to vector<32x128xf32>
    %cst_111 = arith.constant dense<0.000000e+00> : vector<16x128xf32>
    %256 = tpu.matmul %253, %255, %cst_111 {dimension_numbers = #tpu.dot_dimension_numbers<[1], [0], [0], [1], [0, 0, 1, 1], [], []>} : vector<16x32xf32>, vector<32x128xf32>, vector<16x128xf32> -> vector<16x128xf32>
    %c1_112 = arith.constant 1 : index
    %c0_113 = arith.constant 0 : index
    %c0_114 = arith.constant 0 : index
    %257 = vector.load %arg12[%c1_112, %c0_113, %c0_114] : memref<2x1x128xf32, #tpu.memory_space<vmem>>, vector<1x1x128xf32>
    %258 = vector.shape_cast %257 : vector<1x1x128xf32> to vector<1x128xf32>
    %259 = vector.broadcast %258 : vector<1x128xf32> to vector<16x128xf32>
    %260 = arith.addf %256, %259 : vector<16x128xf32>
    %cst_115 = arith.constant 5.000000e-01 : f32
    %261 = vector.broadcast %cst_115 : f32 to vector<16x128xf32>
    %262 = arith.mulf %261, %260 : vector<16x128xf32>
    %cst_116 = arith.constant 4.471500e-02 : f32
    %263 = vector.broadcast %cst_116 : f32 to vector<16x128xf32>
    %264 = arith.mulf %263, %260 : vector<16x128xf32>
    %265 = arith.mulf %264, %260 : vector<16x128xf32>
    %266 = arith.mulf %265, %260 : vector<16x128xf32>
    %267 = arith.addf %260, %266 : vector<16x128xf32>
    %cst_117 = arith.constant 0.797884583 : f32
    %268 = vector.broadcast %cst_117 : f32 to vector<16x128xf32>
    %269 = arith.mulf %268, %267 : vector<16x128xf32>
    %270 = math.tanh %269 : vector<16x128xf32>
    %cst_118 = arith.constant 1.000000e+00 : f32
    %271 = vector.broadcast %cst_118 : f32 to vector<16x128xf32>
    %272 = arith.addf %271, %270 : vector<16x128xf32>
    %273 = arith.mulf %262, %272 : vector<16x128xf32>
    %c1_119 = arith.constant 1 : index
    %c0_120 = arith.constant 0 : index
    %c0_121 = arith.constant 0 : index
    %274 = vector.load %arg13[%c1_119, %c0_120, %c0_121] : memref<2x128x32xf32, #tpu.memory_space<vmem>>, vector<1x128x32xf32>
    %275 = vector.shape_cast %274 : vector<1x128x32xf32> to vector<128x32xf32>
    %cst_122 = arith.constant dense<0.000000e+00> : vector<16x32xf32>
    %276 = tpu.matmul %273, %275, %cst_122 {dimension_numbers = #tpu.dot_dimension_numbers<[1], [0], [0], [1], [0, 0, 1, 1], [], []>} : vector<16x128xf32>, vector<128x32xf32>, vector<16x32xf32> -> vector<16x32xf32>
    %c1_123 = arith.constant 1 : index
    %c0_124 = arith.constant 0 : index
    %c0_125 = arith.constant 0 : index
    %277 = vector.load %arg14[%c1_123, %c0_124, %c0_125] : memref<2x1x32xf32, #tpu.memory_space<vmem>>, vector<1x1x32xf32>
    %278 = vector.shape_cast %277 : vector<1x1x32xf32> to vector<1x32xf32>
    %279 = vector.broadcast %278 : vector<1x32xf32> to vector<16x32xf32>
    %280 = arith.addf %276, %279 : vector<16x32xf32>
    %281 = arith.addf %229, %280 : vector<16x32xf32>
    %282 = vector.shape_cast %281 : vector<16x32xf32> to vector<2x8x32xf32>
    %283 = vector.extract_strided_slice %282 {offsets = [0, 7, 0], sizes = [2, 1, 32], strides = [1, 1, 1]} : vector<2x8x32xf32> to vector<2x1x32xf32>
    %284 = vector.shape_cast %283 : vector<2x1x32xf32> to vector<2x32xf32>
    %c0_126 = arith.constant 0 : index
    %c0_127 = arith.constant 0 : index
    %285 = vector.load %arg15[%c0_126, %c0_127] : memref<1x32xf32, #tpu.memory_space<vmem>>, vector<1x32xf32>
    %c0_128 = arith.constant 0 : index
    %c0_129 = arith.constant 0 : index
    %286 = vector.load %arg16[%c0_128, %c0_129] : memref<1x32xf32, #tpu.memory_space<vmem>>, vector<1x32xf32>
    %cst_130 = arith.constant dense<0.000000e+00> : vector<2xf32>
    %287 = vector.multi_reduction <add>, %284, %cst_130 [1] : vector<2x32xf32> to vector<2xf32>
    %288 = vector.shape_cast %287 : vector<2xf32> to vector<2x1xf32>
    %cst_131 = arith.constant 3.200000e+01 : f32
    %289 = vector.broadcast %cst_131 : f32 to vector<2x1xf32>
    %290 = arith.divf %288, %289 : vector<2x1xf32>
    %291 = vector.broadcast %290 : vector<2x1xf32> to vector<2x32xf32>
    %292 = arith.subf %284, %291 : vector<2x32xf32>
    %293 = arith.mulf %292, %292 : vector<2x32xf32>
    %cst_132 = arith.constant dense<0.000000e+00> : vector<2xf32>
    %294 = vector.multi_reduction <add>, %293, %cst_132 [1] : vector<2x32xf32> to vector<2xf32>
    %295 = vector.shape_cast %294 : vector<2xf32> to vector<2x1xf32>
    %cst_133 = arith.constant 3.200000e+01 : f32
    %296 = vector.broadcast %cst_133 : f32 to vector<2x1xf32>
    %297 = arith.divf %295, %296 : vector<2x1xf32>
    %cst_134 = arith.constant 9.99999974E-6 : f32
    %298 = vector.broadcast %cst_134 : f32 to vector<2x1xf32>
    %299 = arith.addf %297, %298 : vector<2x1xf32>
    %300 = math.rsqrt %299 : vector<2x1xf32>
    %301 = vector.broadcast %300 : vector<2x1xf32> to vector<2x32xf32>
    %302 = arith.mulf %292, %301 : vector<2x32xf32>
    %303 = vector.broadcast %285 : vector<1x32xf32> to vector<2x32xf32>
    %304 = arith.mulf %302, %303 : vector<2x32xf32>
    %305 = vector.broadcast %286 : vector<1x32xf32> to vector<2x32xf32>
    %306 = arith.addf %304, %305 : vector<2x32xf32>
    %c0_135 = arith.constant 0 : index
    %c0_136 = arith.constant 0 : index
    %307 = vector.load %arg1[%c0_135, %c0_136] : memref<256x32xf32, #tpu.memory_space<vmem>>, vector<256x32xf32>
    %cst_137 = arith.constant dense<0.000000e+00> : vector<2x256xf32>
    %308 = tpu.matmul %306, %307, %cst_137 {dimension_numbers = #tpu.dot_dimension_numbers<[1], [1], [0], [0], [0, 0, 1, 0], [], []>} : vector<2x32xf32>, vector<256x32xf32>, vector<2x256xf32> -> vector<2x256xf32>
    %c0_138 = arith.constant 0 : index
    %c0_139 = arith.constant 0 : index
    %309 = vector.load %arg17[%c0_138, %c0_139] : memref<2x256xf32, #tpu.memory_space<vmem>>, vector<2x256xf32>
    tpu.vector_store %arg17[%c0_138, %c0_139], %308 {strides = array<i32>} : memref<2x256xf32, #tpu.memory_space<vmem>>, vector<2x256xf32>,
    return
  }
}

</mosaic_0001>

<bundles_post_ra>
// kernel: gpt_forward.1
= control target key start
LH: loop header
LB: loop body
LE: loop exit
PB: predicated region body
PF: predicated region fallthrough
CT: control target
= control target key end

     0   :  { %v5145_v0 = vmov 0   ;;  %v58_v51 = vlaneseq  ;;  %v5146_v55 = vmov 1.0   ;;  %vm190_vm4 = vcmask 261120   ;;  %s5147_s24 = smov 104   ;;  %s5150_s25 = smov 112   ;;  %s6201_s0 = inlined_call_operand.vmem [shape: s32[16,1], index: 0, kind: input, shape index: {}]   ;;  %s6202_s1 = inlined_call_operand.vmem [shape: f32[256,32], index: 1, kind: input, shape index: {}]   ;;  %s6203_s2 = inlined_call_operand.vmem [shape: f32[16,32], index: 2, kind: input, shape index: {}]   ;;  %s6204_s5 = inlined_call_operand.vmem [shape: f32[2,32,96], index: 5, kind: input, shape index: {}]   ;;  %s6205_s3 = inlined_call_operand.vmem [shape: f32[2,1,32], index: 3, kind: input, shape index: {}]   ;;  %s6206_s4 = inlined_call_operand.vmem [shape: f32[2,1,32], index: 4, kind: input, shape index: {}]   ;;  %s6207_s6 = inlined_call_operand.vmem [shape: f32[2,1,96], index: 6, kind: input, shape index: {}]   ;;  %s6208_s7 = inlined_call_operand.vmem [shape: f32[2,32,32], index: 7, kind: input, shape index: {}]   ;;  %s6209_s8 = inlined_call_operand.vmem [shape: f32[2,1,32], index: 8, kind: input, shape index: {}]   ;;  %s6210_s11 = inlined_call_operand.vmem [shape: f32[2,32,128], index: 11, kind: input, shape index: {}]   ;;  %s6211_s13 = inlined_call_operand.vmem [shape: f32[2,128,32], index: 13, kind: input, shape index: {}]   ;;  %s6212_s9 = inlined_call_operand.vmem [shape: f32[2,1,32], index: 9, kind: input, shape index: {}]   ;;  %s6213_s10 = inlined_call_operand.vmem [shape: f32[2,1,32], index: 10, kind: input, shape index: {}]   ;;  %s6214_s12 = inlined_call_operand.vmem [shape: f32[2,1,128], index: 12, kind: input, shape index: {}]   ;;  %s6215_s14 = inlined_call_operand.vmem [shape: f32[2,1,32], index: 14, kind: input, shape index: {}]   ;;  %s6216_s15 = inlined_call_operand.vmem [shape: f32[1,32], index: 15, kind: input, shape index: {}]   ;;  %s6217_s16 = inlined_call_operand.vmem [shape: f32[1,32], index: 16, kind: input, shape index: {}]   ;;  %s6218_s17 = inlined_call_operand.vmem [shape: f32[2,256], index: 17, kind: output, shape index: {}]  }
   0x1   :  { %6227 = sst [smem:[#allocation2_spill]] %s6201_s0  ;;  %5052 = vset.pattern.permute.xlu0 %v5145_v0  ;;  %v182_v59 = vld [vmem:[%s6203_s2] sm:$0xff]  ;;  %s5148_s2 = smov 120   ;;  %vm5151_vm5 = vmmov 0   ;;  %vm342_vm6 = vcmask 64512   ;;  %vm1689_vm8 = vcmask 130048   ;;  %vm6062_vm12 = vmpackc.low %vm190_vm4, %vm190_vm4 }
   0x2   :  { %6228 = sst [smem:[#allocation3_spill]] %s6202_s1  ;;  %s6229_s26 = sld [smem:[#allocation2_spill]]  ;;  %v5350_v52 = vand.u32 127, %v58_v51  ;;  %vm1692_vm9 = vcmask 195584   ;;  %vm3910_vm10 = vcmask 261127   ;;  %vm3914_vm11 = vcmask 253952  }
   0x3   :  { %s6230_s30 = sld [smem:[#allocation3_spill]]  ;;  %s5153_s27 = smov 64   ;;  %vm4005_vm13 = vcmask 1041409  }
   0x4   :  { %v60_v53 = vadd.s32 128, %v5350_v52  ;;  %s6225_s28 = smov 8   ;;  %s6223_s1 = smov 16  }
   0x5   :  { %s6221_s29 = smov 24   ;;  %s6234_s0 = smov 16  }
   0x6   :  { %s6235_s18 = smov 24  }
   0x8   :  { %v56_v1 = vld [vmem:[%s6229_s26] sm:$0xff]  ;;  %v57_v2 = vld [vmem:[%s6229_s26 + $0x8] sm:$0xff]  ;;  %s5152_s26 = smov 96  }
   0x9   :  { %v91_v3 = vld [vmem:[%s6230_s30 + $0x80] sm:$0xff]  ;;  %62 = vperm.xlu0 %5052, %v56_v1   ;;  %v92_v4 = vld [vmem:[%s6230_s30 + $0x88] sm:$0xff]  ;;  %v93_v9 = vld [vmem:[%s6230_s30 + $0x90] sm:$0xff] }
   0xa   :  { %v75_v5 = vld [vmem:[%s6230_s30] sm:$0xff]  ;;  %v76_v6 = vld [vmem:[%s6230_s30 + $0x8] sm:$0xff]  ;;  %v4848_v7 = vpack.c.bf16 %v92_v4, %v91_v3  ;;  %v94_v10 = vld [vmem:[%s6230_s30 + $0x98] sm:$0xff] }
   0xb   :  { %v4850_v8 = vpack.c.bf16 %v76_v6, %v75_v5  ;;  %v77_v11 = vld [vmem:[%s6230_s30 + $0x10] sm:$0xff]  ;;  %v4852_v12 = vpack.c.bf16 %v94_v10, %v93_v9  ;;  %v78_v13 = vld [vmem:[%s6230_s30 + $0x18] sm:$0xff]  ;;  %v95_v14 = vld [vmem:[%s6230_s30 + $0xa0] sm:$0xff] }
   0xc   :  { %v96_v15 = vld [vmem:[%s6230_s30 + $0xa8] sm:$0xff]  ;;  %4849 = vmatprep.subr.bf16.mxu0 %v4848_v7  ;;  %v4854_v16 = vpack.c.bf16 %v78_v13, %v77_v11  ;;  %v79_v18 = vld [vmem:[%s6230_s30 + $0x20] sm:$0xff]  ;;  %v97_v20 = vld [vmem:[%s6230_s30 + $0xb0] sm:$0xff] }
   0xd   :  { %65 = vperm.xlu0 %5052, %v57_v2   ;;  %4851 = vmatpush3.bf16.msra.mxu0 %v4850_v8  ;;  %v4856_v17 = vpack.c.bf16 %v96_v15, %v95_v14  ;;  %v80_v19 = vld [vmem:[%s6230_s30 + $0x28] sm:$0xff]  ;;  %v98_v21 = vld [vmem:[%s6230_s30 + $0xb8] sm:$0xff]  ;;  %v81_v24 = vld [vmem:[%s6230_s30 + $0x30] sm:$0xff] }
   0xe   :  { %4853 = vmatprep.subr.bf16.mxu0 %v4852_v12  ;;  %v4858_v22 = vpack.c.bf16 %v80_v19, %v79_v18  ;;  %v4860_v23 = vpack.c.bf16 %v98_v21, %v97_v20  ;;  %v82_v25 = vld [vmem:[%s6230_s30 + $0x38] sm:$0xff]  ;;  %v99_v26 = vld [vmem:[%s6230_s30 + $0xc0] sm:$0xff]  ;;  %v100_v27 = vld [vmem:[%s6230_s30 + $0xc8] sm:$0xff] }
   0xf   :  { %v4862_v28 = vpack.c.bf16 %v82_v25, %v81_v24  ;;  %v4864_v29 = vpack.c.bf16 %v100_v27, %v99_v26  ;;  %v83_v30 = vld [vmem:[%s6230_s30 + $0x40] sm:$0xff]  ;;  %v84_v31 = vld [vmem:[%s6230_s30 + $0x48] sm:$0xff]  ;;  %v101_v32 = vld [vmem:[%s6230_s30 + $0xd0] sm:$0xff] }
  0x10   :  { %v102_v33 = vld [vmem:[%s6230_s30 + $0xd8] sm:$0xff]  ;;  %v4866_v34 = vpack.c.bf16 %v84_v31, %v83_v30  ;;  %v85_v36 = vld [vmem:[%s6230_s30 + $0x50] sm:$0xff]  ;;  %v103_v38 = vld [vmem:[%s6230_s30 + $0xe0] sm:$0xff] }
  0x11   :  { %4855 = vmatpush3.bf16.msra.mxu0 %v4854_v16  ;;  %v4868_v35 = vpack.c.bf16 %v102_v33, %v101_v32  ;;  %v86_v37 = vld [vmem:[%s6230_s30 + $0x58] sm:$0xff]  ;;  %v104_v39 = vld [vmem:[%s6230_s30 + $0xe8] sm:$0xff]  ;;  %v87_v42 = vld [vmem:[%s6230_s30 + $0x60] sm:$0xff] }
  0x12   :  { %4857 = vmatprep.subr.bf16.mxu0 %v4856_v17  ;;  %v4870_v40 = vpack.c.bf16 %v86_v37, %v85_v36  ;;  %v4872_v41 = vpack.c.bf16 %v104_v39, %v103_v38  ;;  %v88_v43 = vld [vmem:[%s6230_s30 + $0x68] sm:$0xff]  ;;  %v105_v44 = vld [vmem:[%s6230_s30 + $0xf0] sm:$0xff]  ;;  %v106_v45 = vld [vmem:[%s6230_s30 + $0xf8] sm:$0xff] }
  0x13   :  { %v4874_v46 = vpack.c.bf16 %v88_v43, %v87_v42  ;;  %v4876_v47 = vpack.c.bf16 %v106_v45, %v105_v44  ;;  %v89_v48 = vld [vmem:[%s6230_s30 + $0x70] sm:$0xff]  ;;  %v90_v49 = vld [vmem:[%s6230_s30 + $0x78] sm:$0xff]  ;;  %v234_v14 = vld [vmem:[%s6204_s5] sm:$0xff] }
  0x14   :  { %v4878_v50 = vpack.c.bf16 %v90_v49, %v89_v48  ;;  %v235_v15 = vld [vmem:[%s6204_s5 + $0x8] sm:$0xff]  ;;  %v236_v16 = vld [vmem:[%s6204_s5 + $0x10] sm:$0xff]  ;;  %v237_v18 = vld [vmem:[%s6204_s5 + $0x18] sm:$0xff] }
  0x15   :  { %4859 = vmatpush3.bf16.msra.mxu0 %v4858_v22  ;;  %v4880_v17 = vpack.c.bf16 %v235_v15, %v234_v14  ;;  %v4884_v19 = vpack.c.bf16 %v237_v18, %v236_v16  ;;  %v4196_v27 = vld [vmem:[%s6205_s3] ss:$0 sm:$0xff] }
  0x16   :  { %4861 = vmatprep.subr.bf16.mxu0 %v4860_v23  ;;  %v4198_v36 = vld [vmem:[%s6207_s6] ss:$0 sm:$0xff] }
  0x17   :  { %4881 = vmatprep.subr.bf16.mxu1 %v4880_v17 }
  0x18   :  { %4883 = vmatpush3.bf16.msra.mxu1 %v4880_v17 }
  0x19   :  { %4863 = vmatpush3.bf16.msra.mxu0 %v4862_v28  ;;  %4885 = vmatprep.subr.bf16.mxu1 %v4884_v19 }
  0x1a   :  { %4865 = vmatprep.subr.bf16.mxu0 %v4864_v29  ;;  %v4197_v29 = vld [vmem:[%s6206_s4] ss:$0 sm:$0xff] }
  0x1c   :  { %4887 = vmatpush3.bf16.msra.mxu1 %v4884_v19 }
  0x1d   :  { %4867 = vmatpush3.bf16.msra.mxu0 %v4866_v34 }
  0x1e   :  { %4869 = vmatprep.subr.bf16.mxu0 %v4868_v35 }
  0x21   :  { %4871 = vmatpush3.bf16.msra.mxu0 %v4870_v40 }
  0x22   :  { %4873 = vmatprep.subr.bf16.mxu0 %v4872_v41  ;;  %v5149_v41 = vmov 0.0  }
  0x23   :  { %4563 = vmatprep.subr.mxu1 %v5149_v41 }
  0x25   :  { %4875 = vmatpush3.bf16.msra.mxu0 %v4874_v46 }
  0x26   :  { %4877 = vmatprep.subr.bf16.mxu0 %v4876_v47 }
  0x29   :  { %4879 = vmatpush3.bf16.msra.mxu0 %v4878_v50 }
  0x2a   :  { %4598 = vmatprep.subr.mxu0 %v5149_v41 }
  0x88   :  { %v63_v54 = vpop.permute.xlu0 %62 }
  0x89   :  { %vm68_vm0 = vcmp.eq.s32.totalorder %v60_v53, %v63_v54  ;;  %vm67_vm1 = vcmp.eq.s32.totalorder %v5350_v52, %v63_v54 }
  0x8a   :  { %4192 = vmatprep.mubr.msk.f32.mxu0 %vm68_vm0, %v5146_v55 }
  0x8b   :  { %4193 = vmatmul.mubr.msk.f32.vlgmr.msra.gmra.mrb[0].mxu0 %vm67_vm1, %v5146_v55 }
  0x8c   :  { %v66_v56 = vpop.permute.xlu0 %65 }
  0x8d   :  { %vm70_vm2 = vcmp.eq.s32.totalorder %v60_v53, %v66_v56  ;;  %vm69_vm3 = vcmp.eq.s32.totalorder %v5350_v52, %v66_v56 }
  0x8e   :  { %4194 = vmatprep.mubr.msk.f32.mxu0 %vm70_vm2, %v5146_v55 }
  0x8f   :  { %4195 = vmatmul.mubr.msk.f32.gmra.mrb[2].mxu0 %vm69_vm3, %v5146_v55 }
  0x90   :  { %4600 = vmatprep.mubr.msk.f32.mxu0 %vm5151_vm5, %v5149_v41 }
 0x15e   :  { %v4376_v57 = vpop.f32.mrb[0].mxu0 }
 0x15f   :  { %v4377_v58 = vpop.f32.mrb[1].mxu0 }
 0x160   :  { %v4378_v60 = vadd.f32 %v4377_v58, %v4376_v57  ;;  %v186_v58 = vshrl.u32 %v58_v51, 7 }
 0x162   :  { %v5358_v61 = vadd.f32 %v4378_v60, %v182_v59  ;;  %v4379_v62 = vpop.f32.mrb[2].mxu0  ;;  %vm5493_vm7 = vcmp.ge.s32.totalorder %v186_v58, %v5350_v52 }
 0x163   :  { %v4380_v63 = vpop.f32.mrb[3].mxu0 }
 0x164   :  { %v4381_v0 = vadd.f32 %v4380_v63, %v4379_v62  ;;  %v191_v1 = vsel %vm190_vm4, %v5358_v61, 0.0 }
 0x165   :  { %192 = vadd.xlane.f32.xlu1 %v191_v1 }
 0x166   :  { %v5362_v2 = vadd.f32 %v4381_v0, %v182_v59 }
 0x168   :  { %v194_v3 = vsel %vm190_vm4, %v5362_v2, 0.0 }
 0x169   :  { %195 = vadd.xlane.f32.xlu1 %v194_v3 }
 0x1f2   :  { %v193_v4 = vpop.xlane.xlu1 %192 }
 0x1f3   :  { %v198_v5 = vmul.f32 0.03125, %v193_v4 }
 0x1f5   :  { %v200_v6 = vsub.f32 %v5358_v61, %v198_v5 }
 0x1f6   :  { %v196_v7 = vpop.xlane.xlu1 %195 }
 0x1f7   :  { %v199_v8 = vmul.f32 0.03125, %v196_v7  ;;  %v202_v9 = vmul.f32 %v200_v6, %v200_v6 }
 0x1f9   :  { %v201_v10 = vsub.f32 %v5362_v2, %v199_v8  ;;  %v204_v11 = vsel %vm190_vm4, %v202_v9, 0.0 }
 0x1fa   :  { %205 = vadd.xlane.f32.xlu0 %v204_v11 }
 0x1fb   :  { %v203_v12 = vmul.f32 %v201_v10, %v201_v10 }
 0x1fd   :  { %v207_v13 = vsel %vm190_vm4, %v203_v12, 0.0 }
 0x1fe   :  { %208 = vadd.xlane.f32.xlu1 %v207_v13 }
 0x287   :  { %v206_v20 = vpop.xlane.xlu0 %205 }
 0x288   :  { %v210_v21 = vmul.f32 0.03125, %v206_v20 }
 0x28a   :  { %v212_v22 = vadd.f32 1e-05, %v210_v21 }
 0x28b   :  { %v209_v23 = vpop.xlane.xlu1 %208 }
 0x28c   :  { %5053 = vrsqrt.f32 %v212_v22  ;;  %v211_v24 = vmul.f32 0.03125, %v209_v23 }
 0x28e   :  { %v213_v25 = vadd.f32 1e-05, %v211_v24 }
 0x290   :  { %5055 = vrsqrt.f32 %v213_v25 }
 0x296   :  { %v5054_v26 = vpop.eup %5053 }
 0x297   :  { %v216_v28 = vmul.f32 %v5054_v26, %v200_v6 }
 0x299   :  { %v224_v30 = vmul.f32 %v4196_v27, %v216_v28 }
 0x29a   :  { %v5056_v31 = vpop.eup %5055 }
 0x29b   :  { %v217_v32 = vmul.f32 %v5056_v31, %v201_v10  ;;  %v232_v33 = vadd.f32 %v4197_v29, %v224_v30 }
 0x29d   :  { %v225_v34 = vmul.f32 %v4196_v27, %v217_v32  ;;  %4560 = vmatprep.mubr.msk.f32.mxu1 %vm190_vm4, %v232_v33 }
 0x29f   :  { %v233_v35 = vadd.f32 %v4197_v29, %v225_v34 }
 0x2a1   :  { %4561 = vmatmul.mubr.msk.f32.vlgmr.msra.gmra.mrb[0].mxu1 %vm190_vm4, %v233_v35 }
 0x2a2   :  { %4565 = vmatprep.mubr.msk.f32.mxu1 %vm5151_vm5, %v5149_v41 }
 0x374   :  { %v4562_v37 = vpop.f32.mrb[0].mxu1 }
 0x375   :  { %v317_v38 = vpop.f32.mrb[1].mxu1  ;;  %v5399_v40 = vadd.f32 %v4562_v37, %v4198_v36 }
 0x376   :  { %v5393_v39 = vadd.f32 %v4198_v36, %v317_v38 }
 0x378   :  { %336 = vrot.lane.b32.xlu0 %v5393_v39, %s5147_s24  ;;  %328 = vrot.lane.b32.xlu1 %v5393_v39, %s5148_s2 }
 0x37c   :  { %330 = vrot.lane.b32.xlu1 %v5399_v40, %s5148_s2 }
 0x380   :  { %332 = vrot.lane.b32.xlu1 %v5393_v39, %s5150_s25 }
 0x384   :  { %334 = vrot.lane.b32.xlu1 %v5399_v40, %s5150_s25 }
 0x388   :  { %338 = vrot.lane.b32.xlu1 %v5399_v40, %s5147_s24 }
 0x38c   :  { %340 = vrot.lane.b32.xlu1 %v5393_v39, %s5152_s26 }
 0x390   :  { %417 = vrot.lane.b32.xlu1 %v5399_v40, %s5152_s26 }
 0x3ea   :  { %v5419_v42 = vpop.permute.xlu1 %328  ;;  %v5431_v45 = vpop.permute.xlu0 %336 }
 0x3eb   :  { %493 = vrot.lane.b32.xlu1 %v5419_v42, %s5152_s26 }
 0x3ee   :  { %v5423_v43 = vpop.permute.xlu1 %330 }
 0x3ef   :  { %569 = vrot.lane.b32.xlu1 %v5423_v43, %s5152_s26 }
 0x3f2   :  { %v5427_v44 = vpop.permute.xlu1 %332 }
 0x3f3   :  { %645 = vrot.lane.b32.xlu0 %v5427_v44, %s5152_s26 }
 0x3f6   :  { %v5433_v46 = vpop.permute.xlu1 %334 }
 0x3f7   :  { %797 = vrot.lane.b32.xlu0 %v5431_v45, %s5152_s26  ;;  %721 = vrot.lane.b32.xlu1 %v5433_v46, %s5152_s26 }
 0x3fa   :  { %v5439_v47 = vpop.permute.xlu1 %338 }
 0x3fb   :  { %873 = vrot.lane.b32.xlu1 %v5439_v47, %s5152_s26 }
 0x3fe   :  { %v341_v48 = vpop.permute.xlu1 %340 }
 0x3ff   :  { %4564 = vmatpush3.xpose.msk.msra.mxu1 %vm342_vm6, %v341_v48 }
 0x400   :  { %4568 = vmatprep.subr.mxu1 %v5149_v41 }
 0x402   :  { %4566 = vmatmul.mubr.msk.f32.vlgmr.msra.gmra.mrb[2].mxu1 %vm342_vm6, %v5393_v39  ;;  %v418_v49 = vpop.permute.xlu1 %417 }
 0x403   :  { %4569 = vmatpush3.xpose.msk.msra.mxu1 %vm342_vm6, %v418_v49  ;;  %4570 = vmatprep.mubr.msk.f32.mxu1 %vm5151_vm5, %v5149_v41 }
 0x404   :  { %4573 = vmatprep.subr.mxu1 %v5149_v41 }
 0x406   :  { %4571 = vmatmul.mubr.msk.f32.vlgmr.msra.gmra.mrb[4].mxu1 %vm342_vm6, %v5399_v40 }
 0x407   :  { %4575 = vmatprep.mubr.msk.f32.mxu1 %vm5151_vm5, %v5149_v41 }
 0x45d   :  { %v494_v50 = vpop.permute.xlu1 %493 }
 0x45e   :  { %4574 = vmatpush3.xpose.msk.msra.mxu1 %vm342_vm6, %v494_v50 }
 0x45f   :  { %4578 = vmatprep.subr.mxu1 %v5149_v41 }
 0x461   :  { %4576 = vmatmul.mubr.msk.f32.vlgmr.msra.gmra.mrb[6].mxu1 %vm342_vm6, %v5419_v42  ;;  %v570_v53 = vpop.permute.xlu1 %569 }
 0x462   :  { %4579 = vmatpush3.xpose.msk.msra.mxu1 %vm342_vm6, %v570_v53  ;;  %4580 = vmatprep.mubr.msk.f32.mxu1 %vm5151_vm5, %v5149_v41 }
 0x463   :  { %4583 = vmatprep.subr.mxu1 %v5149_v41 }
 0x465   :  { %v646_v54 = vpop.permute.xlu0 %645  ;;  %4581 = vmatmul.mubr.msk.f32.vlgmr.msra.gmra.mrb[8].mxu1 %vm342_vm6, %v5423_v43 }
 0x466   :  { %4584 = vmatpush3.xpose.msk.msra.mxu1 %vm342_vm6, %v646_v54  ;;  %4585 = vmatprep.mubr.msk.f32.mxu1 %vm5151_vm5, %v5149_v41 }
 0x467   :  { %4588 = vmatprep.subr.mxu1 %v5149_v41 }
 0x469   :  { %4586 = vmatmul.mubr.msk.f32.vlgmr.msra.gmra.mrb[10].mxu1 %vm342_vm6, %v5427_v44  ;;  %v722_v55 = vpop.permute.xlu1 %721  ;;  %v798_v56 = vpop.permute.xlu0 %797 }
 0x46a   :  { %4589 = vmatpush3.xpose.msk.msra.mxu1 %vm342_vm6, %v722_v55  ;;  %4590 = vmatprep.mubr.msk.f32.mxu1 %vm5151_vm5, %v5149_v41 }
 0x46b   :  { %4593 = vmatprep.subr.mxu1 %v5149_v41 }
 0x46d   :  { %4591 = vmatmul.mubr.msk.f32.vlgmr.msra.gmra.mrb[12].mxu1 %vm342_vm6, %v5433_v46  ;;  %v874_v57 = vpop.permute.xlu1 %873 }
 0x46e   :  { %4594 = vmatpush3.xpose.msk.msra.mxu1 %vm342_vm6, %v798_v56  ;;  %4599 = vmatpush3.xpose.msk.msra.mxu0 %vm342_vm6, %v874_v57 }
 0x46f   :  { %4595 = vmatprep.mubr.msk.f32.mxu1 %vm5151_vm5, %v5149_v41  ;;  %4603 = vmatprep.subr.mxu1 %v5149_v41 }
 0x470   :  { %4608 = vmatprep.subr.mxu0 %v5149_v41 }
 0x471   :  { %4596 = vmatmul.mubr.msk.f32.vlgmr.msra.gmra.mrb[14].mxu1 %vm342_vm6, %v5431_v45  ;;  %4601 = vmatmul.mubr.msk.f32.vlgmr.msra.gmra.mrb[4].mxu0 %vm342_vm6, %v5439_v47 }
 0x472   :  { %4610 = vmatprep.mubr.msk.f32.mxu0 %vm5151_vm5, %v5149_v41  ;;  %4605 = vmatprep.mubr.msk.f32.mxu1 %vm5151_vm5, %v5149_v41 }
 0x4d5   :  { %v413_v60 = vpop.f32.mrb[2].mxu1 }
 0x4d6   :  { %v949_v62 = vmul.f32 0.35355338, %v413_v60  ;;  %v4567_v63 = vpop.f32.mrb[3].mxu1 }
 0x4d8   :  { %v959_v0 = vsel %vm5493_vm7, %v949_v62, -1e+30 }
 0x4d9   :  { %v489_v1 = vpop.f32.mrb[4].mxu1  ;;  %v967_v3 = vsel %vm342_vm6, %v959_v0, -inf }
 0x4da   :  { %v950_v4 = vmul.f32 0.35355338, %v489_v1  ;;  %968 = vmax.xlane.f32.xlu0 %v967_v3  ;;  %v4572_v5 = vpop.f32.mrb[5].mxu1 }
 0x4dc   :  { %v960_v51 = vsel %vm5493_vm7, %v950_v4, -1e+30 }
 0x4dd   :  { %v970_v52 = vsel %vm342_vm6, %v960_v51, -inf }
 0x4de   :  { %971 = vmax.xlane.f32.xlu1 %v970_v52 }
 0x534   :  { %v565_v6 = vpop.f32.mrb[6].mxu1 }
 0x535   :  { %v951_v7 = vmul.f32 0.35355338, %v565_v6  ;;  %v4577_v8 = vpop.f32.mrb[7].mxu1 }
 0x537   :  { %v961_v9 = vsel %vm5493_vm7, %v951_v7, -1e+30 }
 0x538   :  { %v641_v10 = vpop.f32.mrb[8].mxu1  ;;  %v973_v11 = vsel %vm342_vm6, %v961_v9, -inf }
 0x539   :  { %v952_v12 = vmul.f32 0.35355338, %v641_v10  ;;  %974 = vmax.xlane.f32.xlu0 %v973_v11  ;;  %v4582_v13 = vpop.f32.mrb[9].mxu1 }
 0x53b   :  { %v5508_v14 = vsel %vm5493_vm7, %v952_v12, -1e+30 }
 0x53c   :  { %v717_v15 = vpop.f32.mrb[10].mxu1  ;;  %v976_v16 = vsel %vm342_vm6, %v5508_v14, -inf }
 0x53d   :  { %v953_v17 = vmul.f32 0.35355338, %v717_v15  ;;  %977 = vmax.xlane.f32.xlu0 %v976_v16  ;;  %v4587_v18 = vpop.f32.mrb[11].mxu1 }
 0x53f   :  { %v963_v19 = vsel %vm5493_vm7, %v953_v17, -1e+30 }
 0x540   :  { %v793_v20 = vpop.f32.mrb[12].mxu1  ;;  %v979_v21 = vsel %vm342_vm6, %v963_v19, -inf }
 0x541   :  { %v954_v22 = vmul.f32 0.35355338, %v793_v20  ;;  %980 = vmax.xlane.f32.xlu1 %v979_v21  ;;  %v4592_v23 = vpop.f32.mrb[13].mxu1 }
 0x543   :  { %v5517_v24 = vsel %vm5493_vm7, %v954_v22, -1e+30 }
 0x544   :  { %v869_v25 = vpop.f32.mrb[14].mxu1  ;;  %v945_v26 = vpop.f32.mrb[4].mxu0  ;;  %v982_v27 = vsel %vm342_vm6, %v5517_v24, -inf }
 0x545   :  { %v955_v28 = vmul.f32 0.35355338, %v869_v25  ;;  %v956_v29 = vmul.f32 0.35355338, %v945_v26  ;;  %983 = vmax.xlane.f32.xlu0 %v982_v27  ;;  %v4597_v30 = vpop.f32.mrb[15].mxu1  ;;  %v4602_v31 = vpop.f32.mrb[5].mxu0 }
 0x547   :  { %v965_v32 = vsel %vm5493_vm7, %v955_v28, -1e+30  ;;  %v966_v33 = vsel %vm5493_vm7, %v956_v29, -1e+30 }
 0x548   :  { %v985_v34 = vsel %vm342_vm6, %v965_v32, -inf  ;;  %v988_v35 = vsel %vm342_vm6, %v966_v33, -inf }
 0x549   :  { %986 = vmax.xlane.f32.xlu1 %v985_v34  ;;  %989 = vmax.xlane.f32.xlu0 %v988_v35 }
 0x55a   :  { %1055 = vrot.lane.b32.xlu1 %v5393_v39, %s5153_s27 }
 0x55e   :  { %1207 = vrot.lane.b32.xlu1 %v5419_v42, %s5153_s27 }
 0x55f   :  { %1131 = vrot.lane.b32.xlu0 %v5399_v40, %s5153_s27 }
 0x562   :  { %1283 = vrot.lane.b32.xlu1 %v5423_v43, %s5153_s27 }
 0x563   :  { %1359 = vrot.lane.b32.xlu0 %v5427_v44, %s5153_s27 }
 0x566   :  { %1435 = vrot.lane.b32.xlu1 %v5433_v46, %s5153_s27 }
 0x567   :  { %v969_v48 = vpop.xlane.xlu0 %968 }
 0x568   :  { %v991_v39 = vsub.f32 %v959_v0, %v969_v48 }
 0x56a   :  { %v999_v49 = vmul.f32 1.442695, %v991_v39 }
 0x56b   :  { %v972_v36 = vpop.xlane.xlu1 %971 }
 0x56c   :  { %v992_v37 = vsub.f32 %v960_v51, %v972_v36 }
 0x56e   :  { %v1001_v38 = vmul.f32 1.442695, %v992_v37 }
 0x570   :  { %5057 = vpow2.f32 %v1001_v38 }
 0x571   :  { %5059 = vpow2.f32 %v999_v49 }
 0x57a   :  { %v5539_v42 = vpop.eup %5057 }
 0x57b   :  { %v1018_v40 = vsel %vm342_vm6, %v5539_v42, 0.0  ;;  %v5543_v43 = vpop.eup %5059 }
 0x57c   :  { %v1015_v44 = vsel %vm342_vm6, %v5543_v43, 0.0 }
 0x582   :  { %1019 = vadd.xlane.f32.xlu0 %v1018_v40 }
 0x58a   :  { %1016 = vadd.xlane.f32.xlu1 %v1015_v44 }
 0x5c6   :  { %v975_v46 = vpop.xlane.xlu0 %974 }
 0x5c7   :  { %v993_v50 = vsub.f32 %v961_v9, %v975_v46 }
 0x5c9   :  { %v1003_v53 = vmul.f32 1.442695, %v993_v50 }
 0x5ca   :  { %v978_v54 = vpop.xlane.xlu0 %977 }
 0x5cb   :  { %5061 = vpow2.f32 %v1003_v53  ;;  %v994_v62 = vsub.f32 %v5508_v14, %v978_v54 }
 0x5cd   :  { %v1005_v5 = vmul.f32 1.442695, %v994_v62  ;;  %v1696_v62 = vld [vmem:[%s6208_s7 + $0x8] sm:$0xff] }
 0x5ce   :  { %v981_v55 = vpop.xlane.xlu1 %980 }
 0x5cf   :  { %v995_v56 = vsub.f32 %v963_v19, %v981_v55 }
 0x5d1   :  { %v1007_v57 = vmul.f32 1.442695, %v995_v56 }
 0x5d2   :  { %v984_v58 = vpop.xlane.xlu0 %983 }
 0x5d3   :  { %5063 = vpow2.f32 %v1007_v57  ;;  %v996_v51 = vsub.f32 %v5517_v24, %v984_v58 }
 0x5d5   :  { %v5547_v60 = vpop.eup %5061  ;;  %v1009_v10 = vmul.f32 1.442695, %v996_v51 }
 0x5d6   :  { %v990_v63 = vpop.xlane.xlu0 %989  ;;  %v987_v0 = vpop.xlane.xlu1 %986  ;;  %v1021_v1 = vsel %vm342_vm6, %v5547_v60, 0.0 }
 0x5d7   :  { %v998_v3 = vsub.f32 %v966_v33, %v990_v63  ;;  %v997_v4 = vsub.f32 %v965_v32, %v987_v0  ;;  %1022 = vadd.xlane.f32.xlu1 %v1021_v1 }
 0x5d9   :  { %v1013_v52 = vmul.f32 1.442695, %v998_v3  ;;  %v1011_v6 = vmul.f32 1.442695, %v997_v4  ;;  %v1697_v3 = vld [vmem:[%s6208_s7 + $0x10] sm:$0xff]  ;;  %v1698_v4 = vld [vmem:[%s6208_s7 + $0x18] sm:$0xff] }
 0x5da   :  { %v1132_v7 = vpop.permute.xlu0 %1131  ;;  %v1056_v8 = vpop.permute.xlu1 %1055 }
 0x5db   :  { %5065 = vpow2.f32 %v1013_v52  ;;  %4604 = vmatpush3.msra.mxu1 %v1056_v8  ;;  %4609 = vmatpush3.msra.mxu0 %v1132_v7 }
 0x5dc   :  { %5067 = vpow2.f32 %v1011_v6  ;;  %4618 = vmatprep.subr.mxu0 %v5149_v41  ;;  %4613 = vmatprep.subr.mxu1 %v5149_v41 }
 0x5dd   :  { %v5064_v9 = vpop.eup %5063  ;;  %5069 = vpow2.f32 %v1005_v5  ;;  %v4892_v5 = vpack.c.bf16 %v1698_v4, %v1697_v3 }
 0x5de   :  { %v1027_v11 = vsel %vm342_vm6, %v5064_v9, 0.0  ;;  %5071 = vpow2.f32 %v1009_v10  ;;  %v1208_v20 = vpop.permute.xlu1 %1207  ;;  %v1360_v21 = vpop.permute.xlu0 %1359 }
 0x5df   :  { %1028 = vadd.xlane.f32.xlu1 %v1027_v11 }
 0x5e2   :  { %v1284_v22 = vpop.permute.xlu1 %1283 }
 0x5e5   :  { %v5556_v12 = vpop.eup %5065 }
 0x5e6   :  { %v5068_v13 = vpop.eup %5067  ;;  %v1036_v14 = vsel %vm342_vm6, %v5556_v12, 0.0  ;;  %v1436_v24 = vpop.permute.xlu1 %1435 }
 0x5e7   :  { %v5070_v15 = vpop.eup %5069  ;;  %1037 = vadd.xlane.f32.xlu0 %v1036_v14  ;;  %v1033_v16 = vsel %vm342_vm6, %v5068_v13, 0.0 }
 0x5e8   :  { %1034 = vadd.xlane.f32.xlu1 %v1033_v16  ;;  %v1024_v17 = vsel %vm342_vm6, %v5070_v15, 0.0  ;;  %v5072_v18 = vpop.eup %5071 }
 0x5e9   :  { %v1030_v19 = vsel %vm342_vm6, %v5072_v18, 0.0 }
 0x5eb   :  { %1025 = vadd.xlane.f32.xlu0 %v1024_v17 }
 0x5ef   :  { %1031 = vadd.xlane.f32.xlu0 %v1030_v19 }
 0x5f9   :  { %1587 = vrot.lane.b32.xlu1 %v5439_v47, %s5153_s27 }
 0x605   :  { %1511 = vrot.lane.b32.xlu0 %v5431_v45, %s5153_s27 }
 0x60f   :  { %v1020_v23 = vpop.xlane.xlu0 %1019 }
 0x610   :  { %5073 = vrcp.f32 %v1020_v23 }
 0x617   :  { %v1017_v25 = vpop.xlane.xlu1 %1016 }
 0x618   :  { %5075 = vrcp.f32 %v1017_v25 }
 0x61a   :  { %v5074_v26 = vpop.eup %5073 }
 0x61b   :  { %v1048_v27 = vmul.f32 %v5074_v26, %v5539_v42 }
 0x61d   :  { %4611 = vmatmul.mubr.msk.f32.vlgmr.msra.gmra.mrb[6].mxu0 %vm342_vm6, %v1048_v27 }
 0x61e   :  { %4619 = vmatpush3.msra.mxu0 %v1284_v22  ;;  %4620 = vmatprep.mubr.msk.f32.mxu0 %vm5151_vm5, %v5149_v41 }
 0x61f   :  { %4628 = vmatprep.subr.mxu0 %v5149_v41 }
 0x622   :  { %v5076_v45 = vpop.eup %5075 }
 0x623   :  { %v1047_v47 = vmul.f32 %v5076_v45, %v5543_v43 }
 0x625   :  { %4606 = vmatmul.mubr.msk.f32.vlgmr.msra.gmra.mrb[16].mxu1 %vm342_vm6, %v1047_v47 }
 0x626   :  { %4614 = vmatpush3.msra.mxu1 %v1208_v20  ;;  %4615 = vmatprep.mubr.msk.f32.mxu1 %vm5151_vm5, %v5149_v41 }
 0x627   :  { %4623 = vmatprep.subr.mxu1 %v5149_v41 }
 0x664   :  { %v1023_v28 = vpop.xlane.xlu1 %1022 }
 0x665   :  { %5077 = vrcp.f32 %v1023_v28 }
 0x66c   :  { %v1029_v29 = vpop.xlane.xlu1 %1028 }
 0x66d   :  { %5079 = vrcp.f32 %v1029_v29 }
 0x66f   :  { %v5078_v30 = vpop.eup %5077 }
 0x670   :  { %v1049_v31 = vmul.f32 %v5078_v30, %v5547_v60  ;;  %v1695_v60 = vld [vmem:[%s6208_s7] sm:$0xff] }
 0x671   :  { %v4888_v0 = vpack.c.bf16 %v1696_v62, %v1695_v60  ;;  %v4228_v62 = vld [vmem:[%s6212_s9] ss:$0 sm:$0xff] }
 0x672   :  { %4616 = vmatmul.mubr.msk.f32.vlgmr.msra.gmra.mrb[18].mxu1 %vm342_vm6, %v1049_v31 }
 0x673   :  { %4624 = vmatpush3.msra.mxu1 %v1360_v21  ;;  %4625 = vmatprep.mubr.msk.f32.mxu1 %vm5151_vm5, %v5149_v41 }
 0x674   :  { %v1038_v32 = vpop.xlane.xlu0 %1037  ;;  %4633 = vmatprep.subr.mxu1 %v5149_v41 }
 0x675   :  { %v1035_v33 = vpop.xlane.xlu1 %1034 }
 0x676   :  { %5081 = vrcp.f32 %v1035_v33 }
 0x677   :  { %v5080_v34 = vpop.eup %5079 }
 0x678   :  { %v1051_v35 = vmul.f32 %v5080_v34, %v5064_v9  ;;  %v1026_v36 = vpop.xlane.xlu0 %1025 }
 0x679   :  { %5083 = vrcp.f32 %v1026_v36  ;;  %v1588_v46 = vpop.permute.xlu1 %1587 }
 0x67a   :  { %4626 = vmatmul.mubr.msk.f32.vlgmr.msra.gmra.mrb[20].mxu1 %vm342_vm6, %v1051_v35 }
 0x67b   :  { %4635 = vmatprep.mubr.msk.f32.mxu1 %vm5151_vm5, %v5149_v41 }
 0x67c   :  { %v1032_v37 = vpop.xlane.xlu0 %1031 }
 0x67d   :  { %5085 = vrcp.f32 %v1032_v37 }
 0x67e   :  { %5087 = vrcp.f32 %v1038_v32 }
 0x680   :  { %v5082_v38 = vpop.eup %5081  ;;  %v1512_v48 = vpop.permute.xlu0 %1511 }
 0x681   :  { %v1053_v39 = vmul.f32 %v5082_v38, %v5068_v13  ;;  %4634 = vmatpush3.msra.mxu1 %v1512_v48  ;;  %v1833_v48 = vld [vmem:[%s6210_s11] sm:$0xff] }
 0x682   :  { %4889 = vmatprep.subr.bf16.mxu1 %v4888_v0 }
 0x683   :  { %v5084_v49 = vpop.eup %5083  ;;  %4636 = vmatmul.mubr.msk.f32.vlgmr.msra.gmra.mrb[22].mxu1 %vm342_vm6, %v1053_v39  ;;  %v1834_v39 = vld [vmem:[%s6210_s11 + $0x8] sm:$0xff] }
 0x684   :  { %v1050_v42 = vmul.f32 %v5084_v49, %v5070_v15  ;;  %4891 = vmatpush3.bf16.msra.mxu1 %v4888_v0  ;;  %v4896_v49 = vpack.c.bf16 %v1834_v39, %v1833_v48  ;;  %v4229_v0 = vld [vmem:[%s6213_s10] ss:$0 sm:$0xff] }
 0x685   :  { %4893 = vmatprep.subr.bf16.mxu1 %v4892_v5 }
 0x686   :  { %4621 = vmatmul.mubr.msk.f32.vlgmr.msra.gmra.mrb[8].mxu0 %vm342_vm6, %v1050_v42  ;;  %v1835_v42 = vld [vmem:[%s6210_s11 + $0x10] sm:$0xff] }
 0x687   :  { %v5086_v40 = vpop.eup %5085  ;;  %4629 = vmatpush3.msra.mxu0 %v1436_v24  ;;  %4630 = vmatprep.mubr.msk.f32.mxu0 %vm5151_vm5, %v5149_v41  ;;  %v4225_v24 = vld [vmem:[%s6209_s8] ss:$0 sm:$0xff] }
 0x688   :  { %v1052_v43 = vmul.f32 %v5086_v40, %v5072_v18  ;;  %4638 = vmatprep.subr.mxu0 %v5149_v41  ;;  %v5088_v44 = vpop.eup %5087  ;;  %4895 = vmatpush3.bf16.msra.mxu1 %v4892_v5  ;;  %v1836_v40 = vld [vmem:[%s6210_s11 + $0x18] sm:$0xff] }
 0x689   :  { %v1054_v50 = vmul.f32 %v5088_v44, %v5556_v12  ;;  %4897 = vmatprep.subr.bf16.mxu1 %v4896_v49  ;;  %v1943_v44 = vld [vmem:[%s6211_s13] sm:$0xff] }
 0x68a   :  { %4631 = vmatmul.mubr.msk.f32.vlgmr.msra.gmra.mrb[10].mxu0 %vm342_vm6, %v1052_v43  ;;  %v4900_v43 = vpack.c.bf16 %v1836_v40, %v1835_v42 }
 0x68b   :  { %4639 = vmatpush3.msra.mxu0 %v1588_v46  ;;  %4640 = vmatprep.mubr.msk.f32.mxu0 %vm5151_vm5, %v5149_v41  ;;  %v1944_v46 = vld [vmem:[%s6211_s13 + $0x8] sm:$0xff] }
 0x68c   :  { %4711 = vmatprep.subr.mxu0 %v5149_v41 }
 0x68e   :  { %4641 = vmatmul.mubr.msk.f32.vlgmr.msra.gmra.mrb[12].mxu0 %vm342_vm6, %v1054_v50  ;;  %v4904_v50 = vpack.c.bf16 %v1944_v46, %v1943_v44 }
 0x68f   :  { %4713 = vmatprep.mubr.msk.f32.mxu0 %vm5151_vm5, %v5149_v41 }
 0x6f0   :  { %v1203_v53 = vpop.f32.mrb[6].mxu0 }
 0x6f1   :  { %v4612_v54 = vpop.f32.mrb[7].mxu0 }
 0x6f8   :  { %v1127_v55 = vpop.f32.mrb[16].mxu1 }
 0x6f9   :  { %v4607_v56 = vpop.f32.mrb[17].mxu1 }
 0x745   :  { %v1279_v57 = vpop.f32.mrb[18].mxu1 }
 0x746   :  { %1665 = vrot.lane.b32.xlu0 %v1279_v57, %s6225_s28  ;;  %v4617_v58 = vpop.f32.mrb[19].mxu1 }
 0x74d   :  { %v1431_v63 = vpop.f32.mrb[20].mxu1 }
 0x74e   :  { %1673 = vrot.lane.b32.xlu0 %v1431_v63, %s6223_s1  ;;  %v4627_v1 = vpop.f32.mrb[21].mxu1 }
 0x756   :  { %v1583_v51 = vpop.f32.mrb[22].mxu1 }
 0x757   :  { %1681 = vrot.lane.b32.xlu0 %v1583_v51, %s6221_s29  ;;  %v4637_v52 = vpop.f32.mrb[23].mxu1 }
 0x759   :  { %v1355_v6 = vpop.f32.mrb[8].mxu0 }
 0x75a   :  { %1667 = vrot.lane.b32.xlu1 %v1355_v6, %s6225_s28  ;;  %v4622_v7 = vpop.f32.mrb[9].mxu0  ;;  %v1945_v6 = vld [vmem:[%s6211_s13 + $0x10] sm:$0xff] }
 0x75b   :  { %v1946_v7 = vld [vmem:[%s6211_s13 + $0x18] sm:$0xff] }
 0x75d   :  { %v1507_v8 = vpop.f32.mrb[10].mxu0 }
 0x75e   :  { %1675 = vrot.lane.b32.xlu1 %v1507_v8, %s6223_s1  ;;  %v4632_v9 = vpop.f32.mrb[11].mxu0  ;;  %v4908_v8 = vpack.c.bf16 %v1946_v7, %v1945_v6  ;;  %v4238_v7 = vld [vmem:[%s6204_s5 + $0x20] sm:$0xff] }
 0x75f   :  { %v1947_v9 = vld [vmem:[%s6211_s13 + $0x20] sm:$0xff] }
 0x761   :  { %v1659_v10 = vpop.f32.mrb[12].mxu0 }
 0x762   :  { %1683 = vrot.lane.b32.xlu1 %v1659_v10, %s6221_s29  ;;  %v4642_v11 = vpop.f32.mrb[13].mxu0  ;;  %v1948_v10 = vld [vmem:[%s6211_s13 + $0x28] sm:$0xff] }
 0x763   :  { %v4912_v11 = vpack.c.bf16 %v1948_v10, %v1947_v9  ;;  %v4240_v10 = vld [vmem:[%s6204_s5 + $0x30] sm:$0xff] }
 0x7b8   :  { %v1666_v12 = vpop.permute.xlu0 %1665 }
 0x7b9   :  { %v1687_v14 = vsel %vm342_vm6, %v1127_v55, %v1666_v12  ;;  %v1949_v12 = vld [vmem:[%s6211_s13 + $0x30] sm:$0xff] }
 0x7c0   :  { %v1674_v13 = vpop.permute.xlu0 %1673 }
 0x7c1   :  { %v1690_v15 = vsel %vm1689_vm8, %v1687_v14, %v1674_v13  ;;  %v1950_v13 = vld [vmem:[%s6211_s13 + $0x38] sm:$0xff] }
 0x7c2   :  { %v4916_v14 = vpack.c.bf16 %v1950_v13, %v1949_v12 }
 0x7c9   :  { %v1682_v16 = vpop.permute.xlu0 %1681 }
 0x7ca   :  { %v1693_v17 = vsel %vm1692_vm9, %v1690_v15, %v1682_v16  ;;  %v1951_v15 = vld [vmem:[%s6211_s13 + $0x40] sm:$0xff]  ;;  %v1952_v16 = vld [vmem:[%s6211_s13 + $0x48] sm:$0xff] }
 0x7cb   :  { %4651 = vmatprep.mubr.msk.f32.mxu1 %vm190_vm4, %v1693_v17  ;;  %v4920_v17 = vpack.c.bf16 %v1952_v16, %v1951_v15 }
 0x7cc   :  { %v1668_v18 = vpop.permute.xlu1 %1667 }
 0x7cd   :  { %v1688_v20 = vsel %vm342_vm6, %v1203_v53, %v1668_v18  ;;  %v1953_v18 = vld [vmem:[%s6211_s13 + $0x50] sm:$0xff] }
 0x7d0   :  { %v1676_v19 = vpop.permute.xlu1 %1675 }
 0x7d1   :  { %v1691_v21 = vsel %vm1689_vm8, %v1688_v20, %v1676_v19  ;;  %v1954_v19 = vld [vmem:[%s6211_s13 + $0x58] sm:$0xff] }
 0x7d2   :  { %v4924_v20 = vpack.c.bf16 %v1954_v19, %v1953_v18 }
 0x7d4   :  { %v1684_v22 = vpop.permute.xlu1 %1683 }
 0x7d5   :  { %v1694_v23 = vsel %vm1692_vm9, %v1691_v21, %v1684_v22  ;;  %v1955_v21 = vld [vmem:[%s6211_s13 + $0x60] sm:$0xff]  ;;  %v1956_v22 = vld [vmem:[%s6211_s13 + $0x68] sm:$0xff] }
 0x7d6   :  { %4652 = vmatmul.mubr.msk.f32.vlgmr.msra.gmra.mrb[24].mxu1 %vm190_vm4, %v1694_v23  ;;  %v4928_v23 = vpack.c.bf16 %v1956_v22, %v1955_v21 }
 0x7d7   :  { %4899 = vmatpush3.bf16.msra.mxu1 %v4896_v49 }
 0x7d8   :  { %4901 = vmatprep.subr.bf16.mxu1 %v4900_v43 }
 0x7db   :  { %4903 = vmatpush3.bf16.msra.mxu1 %v4900_v43 }
 0x7dc   :  { %4905 = vmatprep.subr.bf16.mxu1 %v4904_v50 }
 0x8a9   :  { %v4653_v25 = vpop.f32.mrb[24].mxu1 }
 0x8aa   :  { %v1784_v26 = vadd.f32 %v4653_v25, %v4225_v24  ;;  %v1778_v27 = vpop.f32.mrb[25].mxu1  ;;  %v1958_v25 = vld [vmem:[%s6211_s13 + $0x78] sm:$0xff] }
 0x8ab   :  { %v1779_v45 = vadd.f32 %v4225_v24, %v1778_v27  ;;  %v1957_v24 = vld [vmem:[%s6211_s13 + $0x70] sm:$0xff]  ;;  %v4230_v27 = vld [vmem:[%s6214_s12] ss:$0 sm:$0xff] }
 0x8ac   :  { %v5628_v47 = vadd.f32 %v1784_v26, %v5362_v2  ;;  %v4932_v26 = vpack.c.bf16 %v1958_v25, %v1957_v24 }
 0x8ad   :  { %v5631_v28 = vadd.f32 %v1779_v45, %v5358_v61 }
 0x8ae   :  { %v1794_v29 = vsel %vm190_vm4, %v5628_v47, 0.0 }
 0x8af   :  { %1795 = vadd.xlane.f32.xlu1 %v1794_v29  ;;  %v1791_v30 = vsel %vm190_vm4, %v5631_v28, 0.0 }
 0x8b0   :  { %1792 = vadd.xlane.f32.xlu0 %v1791_v30 }
 0x93c   :  { %v1796_v31 = vpop.xlane.xlu1 %1795 }
 0x93d   :  { %v1798_v32 = vmul.f32 0.03125, %v1796_v31  ;;  %v1793_v33 = vpop.xlane.xlu0 %1792 }
 0x93e   :  { %v1797_v34 = vmul.f32 0.03125, %v1793_v33 }
 0x93f   :  { %v1800_v35 = vsub.f32 %v5628_v47, %v1798_v32 }
 0x940   :  { %v1799_v2 = vsub.f32 %v5631_v28, %v1797_v34 }
 0x941   :  { %v1802_v37 = vmul.f32 %v1800_v35, %v1800_v35 }
 0x942   :  { %v1801_v36 = vmul.f32 %v1799_v2, %v1799_v2 }
 0x943   :  { %v1806_v38 = vsel %vm190_vm4, %v1802_v37, 0.0 }
 0x944   :  { %v1803_v61 = vsel %vm190_vm4, %v1801_v36, 0.0 }
 0x945   :  { %1804 = vadd.xlane.f32.xlu0 %v1803_v61 }
 0x949   :  { %1807 = vadd.xlane.f32.xlu0 %v1806_v38 }
 0x9d2   :  { %v1805_v53 = vpop.xlane.xlu0 %1804 }
 0x9d3   :  { %v1809_v54 = vmul.f32 0.03125, %v1805_v53  ;;  %v4233_v53 = vld [vmem:[%s6215_s14] ss:$0 sm:$0xff] }
 0x9d5   :  { %v1811_v55 = vadd.f32 1e-05, %v1809_v54 }
 0x9d6   :  { %v1808_v56 = vpop.xlane.xlu0 %1807 }
 0x9d7   :  { %5089 = vrsqrt.f32 %v1811_v55  ;;  %v1810_v57 = vmul.f32 0.03125, %v1808_v56 }
 0x9d9   :  { %v1812_v58 = vadd.f32 1e-05, %v1810_v57 }
 0x9db   :  { %5091 = vrsqrt.f32 %v1812_v58 }
 0x9e1   :  { %v5090_v60 = vpop.eup %5089 }
 0x9e2   :  { %v1815_v63 = vmul.f32 %v5090_v60, %v1799_v2 }
 0x9e4   :  { %v1823_v1 = vmul.f32 %v4228_v62, %v1815_v63 }
 0x9e5   :  { %v5092_v3 = vpop.eup %5091 }
 0x9e6   :  { %v1816_v4 = vmul.f32 %v5092_v3, %v1800_v35  ;;  %v1831_v5 = vadd.f32 %v4229_v0, %v1823_v1 }
 0x9e8   :  { %v1824_v51 = vmul.f32 %v4228_v62, %v1816_v4  ;;  %4662 = vmatprep.mubr.msk.f32.mxu1 %vm190_vm4, %v1831_v5 }
 0x9ea   :  { %v1832_v52 = vadd.f32 %v4229_v0, %v1824_v51 }
 0x9ec   :  { %4663 = vmatmul.mubr.msk.f32.vlgmr.msra.gmra.mrb[26].mxu1 %vm190_vm4, %v1832_v52 }
 0x9ed   :  { %4907 = vmatpush3.bf16.msra.mxu1 %v4904_v50 }
 0x9ee   :  { %4909 = vmatprep.subr.bf16.mxu1 %v4908_v8 }
 0x9f1   :  { %4911 = vmatpush3.bf16.msra.mxu1 %v4908_v8  ;;  %v4239_v8 = vld [vmem:[%s6204_s5 + $0x28] sm:$0xff] }
 0x9f2   :  { %4913 = vmatprep.subr.bf16.mxu1 %v4912_v11  ;;  %v4936_v9 = vpack.c.bf16 %v4239_v8, %v4238_v7 }
 0x9f5   :  { %4915 = vmatpush3.bf16.msra.mxu1 %v4912_v11  ;;  %v4241_v11 = vld [vmem:[%s6204_s5 + $0x38] sm:$0xff] }
 0x9f6   :  { %4917 = vmatprep.subr.bf16.mxu1 %v4916_v14  ;;  %v4940_v12 = vpack.c.bf16 %v4241_v11, %v4240_v10 }
 0x9f9   :  { %4919 = vmatpush3.bf16.msra.mxu1 %v4916_v14 }
 0x9fa   :  { %4921 = vmatprep.subr.bf16.mxu1 %v4920_v17 }
 0x9fd   :  { %4923 = vmatpush3.bf16.msra.mxu1 %v4920_v17 }
 0x9fe   :  { %4925 = vmatprep.subr.bf16.mxu1 %v4924_v20 }
 0xa01   :  { %4927 = vmatpush3.bf16.msra.mxu1 %v4924_v20  ;;  %v4236_v20 = vld [vmem:[%s6205_s3 + $0x1] ss:$0 sm:$0xff] }
 0xa02   :  { %4929 = vmatprep.subr.bf16.mxu1 %v4928_v23 }
 0xa05   :  { %4931 = vmatpush3.bf16.msra.mxu1 %v4928_v23  ;;  %v4237_v23 = vld [vmem:[%s6206_s4 + $0x1] ss:$0 sm:$0xff] }
 0xa06   :  { %4933 = vmatprep.subr.bf16.mxu1 %v4932_v26 }
 0xa09   :  { %4935 = vmatpush3.bf16.msra.mxu1 %v4932_v26 }
 0xa0a   :  { %4937 = vmatprep.subr.bf16.mxu1 %v4936_v9 }
 0xabf   :  { %v4664_v45 = vpop.f32.mrb[26].mxu1 }
 0xac0   :  { %v1922_v29 = vadd.f32 %v4664_v45, %v4230_v27  ;;  %v1916_v30 = vpop.f32.mrb[27].mxu1 }
 0xac1   :  { %v1917_v31 = vadd.f32 %v4230_v27, %v1916_v30 }
 0xac2   :  { %v1928_v32 = vmul.f32 0.044715, %v1922_v29  ;;  %v1926_v44 = vmul.f32 0.5, %v1922_v29 }
 0xac3   :  { %v1927_v33 = vmul.f32 0.044715, %v1917_v31  ;;  %v1925_v40 = vmul.f32 0.5, %v1917_v31 }
 0xac4   :  { %v1930_v34 = vmul.f32 %v1928_v32, %v1922_v29 }
 0xac5   :  { %v1929_v35 = vmul.f32 %v1927_v33, %v1917_v31 }
 0xac6   :  { %v1932_v2 = vmul.f32 %v1930_v34, %v1922_v29 }
 0xac7   :  { %v1931_v36 = vmul.f32 %v1929_v35, %v1917_v31 }
 0xac8   :  { %v1934_v61 = vadd.f32 %v1932_v2, %v1922_v29  ;;  %v4243_v29 = vld [vmem:[%s6207_s6 + $0x1] ss:$0 sm:$0xff] }
 0xac9   :  { %v1933_v37 = vadd.f32 %v1931_v36, %v1917_v31 }
 0xaca   :  { %v1936_v38 = vmul.f32 0.7978846, %v1934_v61 }
 0xacb   :  { %v1935_v48 = vmul.f32 0.7978846, %v1933_v37 }
 0xacc   :  { %5093 = vtanh.f32 %v1936_v38 }
 0xacd   :  { %5095 = vtanh.f32 %v1935_v48 }
 0xad6   :  { %v5094_v39 = vpop.eup %5093 }
 0xad7   :  { %v5096_v49 = vpop.eup %5095  ;;  %v1940_v42 = vadd.f32 1.0, %v5094_v39 }
 0xad8   :  { %v1939_v43 = vadd.f32 1.0, %v5096_v49 }
 0xad9   :  { %v1942_v50 = vmul.f32 %v1940_v42, %v1926_v44 }
 0xada   :  { %v1941_v46 = vmul.f32 %v1939_v43, %v1925_v40 }
 0xadc   :  { %4697 = vmatprep.mubr.f32.mxu1 %v1941_v46 }
 0xadd   :  { %4698 = vmatmul.mubr.f32.vlgmr.msra.gmra.mrb[28].mxu1 %v1942_v50 }
 0xade   :  { %4939 = vmatpush3.bf16.msra.mxu1 %v4936_v9 }
 0xadf   :  { %4941 = vmatprep.subr.bf16.mxu1 %v4940_v12 }
 0xae2   :  { %4943 = vmatpush3.bf16.msra.mxu1 %v4940_v12 }
 0xae3   :  { %4741 = vmatprep.subr.mxu1 %v5149_v41 }
 0xbb0   :  { %v4699_v54 = vpop.f32.mrb[28].mxu1 }
 0xbb1   :  { %v2038_v55 = vadd.f32 %v4699_v54, %v4233_v53  ;;  %v2032_v56 = vpop.f32.mrb[29].mxu1 }
 0xbb2   :  { %v2033_v57 = vadd.f32 %v4233_v53, %v2032_v56 }
 0xbb3   :  { %v5716_v58 = vadd.f32 %v2038_v55, %v5628_v47 }
 0xbb4   :  { %v5719_v60 = vadd.f32 %v2033_v57, %v5631_v28 }
 0xbb5   :  { %v2050_v62 = vsel %vm190_vm4, %v5716_v58, 0.0 }
 0xbb6   :  { %2051 = vadd.xlane.f32.xlu0 %v2050_v62  ;;  %v2047_v63 = vsel %vm190_vm4, %v5719_v60, 0.0 }
 0xbb7   :  { %2048 = vadd.xlane.f32.xlu1 %v2047_v63 }
 0xc43   :  { %v2052_v0 = vpop.xlane.xlu0 %2051 }
 0xc44   :  { %v2054_v1 = vmul.f32 0.03125, %v2052_v0  ;;  %v2049_v3 = vpop.xlane.xlu1 %2048 }
 0xc45   :  { %v2053_v4 = vmul.f32 0.03125, %v2049_v3 }
 0xc46   :  { %v2056_v5 = vsub.f32 %v5716_v58, %v2054_v1 }
 0xc47   :  { %v2055_v47 = vsub.f32 %v5719_v60, %v2053_v4 }
 0xc48   :  { %v2058_v51 = vmul.f32 %v2056_v5, %v2056_v5 }
 0xc49   :  { %v2057_v52 = vmul.f32 %v2055_v47, %v2055_v47 }
 0xc4a   :  { %v2062_v28 = vsel %vm190_vm4, %v2058_v51, 0.0 }
 0xc4b   :  { %2063 = vadd.xlane.f32.xlu0 %v2062_v28  ;;  %v2059_v6 = vsel %vm190_vm4, %v2057_v52, 0.0 }
 0xc4c   :  { %2060 = vadd.xlane.f32.xlu1 %v2059_v6 }
 0xcd8   :  { %v2064_v13 = vpop.xlane.xlu0 %2063 }
 0xcd9   :  { %v2066_v14 = vmul.f32 0.03125, %v2064_v13  ;;  %v2061_v15 = vpop.xlane.xlu1 %2060 }
 0xcda   :  { %v2065_v16 = vmul.f32 0.03125, %v2061_v15 }
 0xcdb   :  { %v2068_v17 = vadd.f32 1e-05, %v2066_v14 }
 0xcdc   :  { %v2067_v18 = vadd.f32 1e-05, %v2065_v16 }
 0xcdd   :  { %5097 = vrsqrt.f32 %v2068_v17 }
 0xcde   :  { %5099 = vrsqrt.f32 %v2067_v18 }
 0xce7   :  { %v5098_v19 = vpop.eup %5097 }
 0xce8   :  { %v5100_v21 = vpop.eup %5099  ;;  %v2072_v22 = vmul.f32 %v5098_v19, %v2056_v5 }
 0xce9   :  { %v2071_v24 = vmul.f32 %v5100_v21, %v2055_v47 }
 0xcea   :  { %v2080_v25 = vmul.f32 %v4236_v20, %v2072_v22 }
 0xceb   :  { %v2079_v26 = vmul.f32 %v4236_v20, %v2071_v24 }
 0xcec   :  { %v2088_v27 = vadd.f32 %v4237_v23, %v2080_v25 }
 0xced   :  { %v2087_v45 = vadd.f32 %v4237_v23, %v2079_v26 }
 0xcef   :  { %4708 = vmatprep.mubr.msk.f32.mxu1 %vm190_vm4, %v2087_v45 }
 0xcf0   :  { %4709 = vmatmul.mubr.msk.f32.vlgmr.msra.gmra.mrb[30].mxu1 %vm190_vm4, %v2088_v27 }
 0xcf1   :  { %4743 = vmatprep.mubr.msk.f32.mxu1 %vm5151_vm5, %v5149_v41 }
 0xdc3   :  { %v4710_v30 = vpop.f32.mrb[30].mxu1 }
 0xdc4   :  { %v5755_v31 = vadd.f32 %v4710_v30, %v4243_v29  ;;  %v2174_v32 = vpop.f32.mrb[31].mxu1 }
 0xdc5   :  { %v5757_v33 = vadd.f32 %v4243_v29, %v2174_v32 }
 0xdc6   :  { %2187 = vrot.lane.b32.xlu0 %v5755_v31, %s5148_s2 }
 0xdc7   :  { %2185 = vrot.lane.b32.xlu1 %v5757_v33, %s5148_s2 }
 0xdca   :  { %2193 = vrot.lane.b32.xlu0 %v5757_v33, %s5147_s24 }
 0xdcb   :  { %2189 = vrot.lane.b32.xlu1 %v5757_v33, %s5150_s25 }
 0xdce   :  { %2197 = vrot.lane.b32.xlu0 %v5757_v33, %s5152_s26 }
 0xdcf   :  { %2191 = vrot.lane.b32.xlu1 %v5755_v31, %s5150_s25  ;;  %s6233_s25 = smov 8  }
 0xdd3   :  { %2195 = vrot.lane.b32.xlu1 %v5755_v31, %s5147_s24 }
 0xdd7   :  { %2273 = vrot.lane.b32.xlu1 %v5755_v31, %s5152_s26 }
 0xe38   :  { %v5775_v34 = vpop.permute.xlu0 %2187 }
 0xe39   :  { %2425 = vrot.lane.b32.xlu1 %v5775_v34, %s5152_s26  ;;  %v5779_v35 = vpop.permute.xlu1 %2185 }
 0xe3a   :  { %2349 = vrot.lane.b32.xlu0 %v5779_v35, %s5152_s26 }
 0xe3c   :  { %v5783_v2 = vpop.permute.xlu0 %2193 }
 0xe3d   :  { %v5785_v36 = vpop.permute.xlu1 %2189 }
 0xe3e   :  { %2501 = vrot.lane.b32.xlu0 %v5785_v36, %s5152_s26 }
 0xe40   :  { %v2198_v61 = vpop.permute.xlu0 %2197 }
 0xe41   :  { %4712 = vmatpush3.xpose.msk.msra.mxu0 %vm342_vm6, %v2198_v61  ;;  %v5790_v37 = vpop.permute.xlu1 %2191 }
 0xe42   :  { %2653 = vrot.lane.b32.xlu0 %v5783_v2, %s5152_s26  ;;  %2577 = vrot.lane.b32.xlu1 %v5790_v37, %s5152_s26 }
 0xe43   :  { %4716 = vmatprep.subr.mxu0 %v5149_v41 }
 0xe44   :  { %4714 = vmatmul.mubr.msk.f32.vlgmr.msra.gmra.mrb[14].mxu0 %vm342_vm6, %v5757_v33 }
 0xe45   :  { %v5799_v38 = vpop.permute.xlu1 %2195  ;;  %4718 = vmatprep.mubr.msk.f32.mxu0 %vm5151_vm5, %v5149_v41 }
 0xe46   :  { %2729 = vrot.lane.b32.xlu1 %v5799_v38, %s5152_s26 }
 0xe49   :  { %v2274_v48 = vpop.permute.xlu1 %2273 }
 0xe4a   :  { %4717 = vmatpush3.xpose.msk.msra.mxu0 %vm342_vm6, %v2274_v48 }
 0xe4b   :  { %4721 = vmatprep.subr.mxu0 %v5149_v41 }
 0xe4d   :  { %4719 = vmatmul.mubr.msk.f32.vlgmr.msra.gmra.mrb[16].mxu0 %vm342_vm6, %v5755_v31 }
 0xe4e   :  { %4723 = vmatprep.mubr.msk.f32.mxu0 %vm5151_vm5, %v5149_v41 }
 0xeab   :  { %v2426_v49 = vpop.permute.xlu1 %2425 }
 0xeac   :  { %v2350_v39 = vpop.permute.xlu0 %2349 }
 0xead   :  { %4722 = vmatpush3.xpose.msk.msra.mxu0 %vm342_vm6, %v2350_v39 }
 0xeae   :  { %4726 = vmatprep.subr.mxu0 %v5149_v41 }
 0xeb0   :  { %v2502_v42 = vpop.permute.xlu0 %2501  ;;  %4724 = vmatmul.mubr.msk.f32.vlgmr.msra.gmra.mrb[18].mxu0 %vm342_vm6, %v5779_v35 }
 0xeb1   :  { %4727 = vmatpush3.xpose.msk.msra.mxu0 %vm342_vm6, %v2426_v49  ;;  %4728 = vmatprep.mubr.msk.f32.mxu0 %vm5151_vm5, %v5149_v41 }
 0xeb2   :  { %4731 = vmatprep.subr.mxu0 %v5149_v41 }
 0xeb4   :  { %v2654_v40 = vpop.permute.xlu0 %2653  ;;  %4729 = vmatmul.mubr.msk.f32.vlgmr.msra.gmra.mrb[20].mxu0 %vm342_vm6, %v5775_v34  ;;  %v2578_v43 = vpop.permute.xlu1 %2577 }
 0xeb5   :  { %4732 = vmatpush3.xpose.msk.msra.mxu0 %vm342_vm6, %v2502_v42  ;;  %4742 = vmatpush3.xpose.msk.msra.mxu1 %vm342_vm6, %v2654_v40 }
 0xeb6   :  { %4733 = vmatprep.mubr.msk.f32.mxu0 %vm5151_vm5, %v5149_v41  ;;  %4736 = vmatprep.subr.mxu0 %v5149_v41 }
 0xeb7   :  { %4751 = vmatprep.subr.mxu1 %v5149_v41 }
 0xeb8   :  { %4734 = vmatmul.mubr.msk.f32.vlgmr.msra.gmra.mrb[22].mxu0 %vm342_vm6, %v5785_v36  ;;  %4744 = vmatmul.mubr.msk.f32.vlgmr.msra.gmra.mrb[32].mxu1 %vm342_vm6, %v5783_v2  ;;  %v2730_v44 = vpop.permute.xlu1 %2729 }
 0xeb9   :  { %4737 = vmatpush3.xpose.msk.msra.mxu0 %vm342_vm6, %v2578_v43  ;;  %4738 = vmatprep.mubr.msk.f32.mxu0 %vm5151_vm5, %v5149_v41 }
 0xeba   :  { %4746 = vmatprep.subr.mxu0 %v5149_v41  ;;  %4753 = vmatprep.mubr.msk.f32.mxu1 %vm5151_vm5, %v5149_v41 }
 0xebc   :  { %4739 = vmatmul.mubr.msk.f32.vlgmr.msra.gmra.mrb[24].mxu0 %vm342_vm6, %v5790_v37 }
 0xebd   :  { %4747 = vmatpush3.xpose.msk.msra.mxu0 %vm342_vm6, %v2730_v44  ;;  %4748 = vmatprep.mubr.msk.f32.mxu0 %vm5151_vm5, %v5149_v41 }
 0xebe   :  { %4756 = vmatprep.subr.mxu0 %v5149_v41 }
 0xec0   :  { %4749 = vmatmul.mubr.msk.f32.vlgmr.msra.gmra.mrb[26].mxu0 %vm342_vm6, %v5799_v38 }
 0xec1   :  { %4758 = vmatprep.mubr.msk.f32.mxu0 %vm5151_vm5, %v5149_v41 }
 0xf17   :  { %v2269_v46 = vpop.f32.mrb[14].mxu0 }
 0xf18   :  { %v2805_v50 = vmul.f32 0.35355338, %v2269_v46  ;;  %v4715_v53 = vpop.f32.mrb[15].mxu0 }
 0xf1a   :  { %v2813_v54 = vsel %vm5493_vm7, %v2805_v50, -1e+30 }
 0xf1b   :  { %v2821_v55 = vsel %vm342_vm6, %v2813_v54, -inf }
 0xf1c   :  { %2822 = vmax.xlane.f32.xlu0 %v2821_v55 }
 0xf20   :  { %v2345_v56 = vpop.f32.mrb[16].mxu0 }
 0xf21   :  { %v2806_v57 = vmul.f32 0.35355338, %v2345_v56  ;;  %v4720_v62 = vpop.f32.mrb[17].mxu0 }
 0xf23   :  { %v2814_v63 = vsel %vm5493_vm7, %v2806_v57, -1e+30 }
 0xf24   :  { %v2824_v0 = vsel %vm342_vm6, %v2814_v63, -inf }
 0xf25   :  { %2825 = vmax.xlane.f32.xlu1 %v2824_v0 }
 0xf83   :  { %v2421_v1 = vpop.f32.mrb[18].mxu0 }
 0xf84   :  { %v2807_v3 = vmul.f32 0.35355338, %v2421_v1  ;;  %v4725_v4 = vpop.f32.mrb[19].mxu0 }
 0xf86   :  { %v2815_v5 = vsel %vm5493_vm7, %v2807_v3, -1e+30 }
 0xf87   :  { %v2497_v47 = vpop.f32.mrb[20].mxu0  ;;  %v2827_v51 = vsel %vm342_vm6, %v2815_v5, -inf }
 0xf88   :  { %v2808_v52 = vmul.f32 0.35355338, %v2497_v47  ;;  %2828 = vmax.xlane.f32.xlu0 %v2827_v51  ;;  %v4730_v28 = vpop.f32.mrb[21].mxu0 }
 0xf8a   :  { %v2816_v6 = vsel %vm5493_vm7, %v2808_v52, -1e+30 }
 0xf8b   :  { %v2573_v7 = vpop.f32.mrb[22].mxu0  ;;  %v2725_v8 = vpop.f32.mrb[32].mxu1  ;;  %v2830_v9 = vsel %vm342_vm6, %v2816_v6, -inf }
 0xf8c   :  { %v2809_v10 = vmul.f32 0.35355338, %v2573_v7  ;;  %v2811_v11 = vmul.f32 0.35355338, %v2725_v8  ;;  %v4745_v12 = vpop.f32.mrb[33].mxu1  ;;  %2831 = vmax.xlane.f32.xlu0 %v2830_v9  ;;  %v4735_v13 = vpop.f32.mrb[23].mxu0 }
 0xf8e   :  { %v2817_v14 = vsel %vm5493_vm7, %v2809_v10, -1e+30  ;;  %v2819_v19 = vsel %vm5493_vm7, %v2811_v11, -1e+30 }
 0xf8f   :  { %v2649_v15 = vpop.f32.mrb[24].mxu0  ;;  %v2833_v16 = vsel %vm342_vm6, %v2817_v14, -inf  ;;  %v2839_v22 = vsel %vm342_vm6, %v2819_v19, -inf }
 0xf90   :  { %v2810_v17 = vmul.f32 0.35355338, %v2649_v15  ;;  %2834 = vmax.xlane.f32.xlu1 %v2833_v16  ;;  %v4740_v18 = vpop.f32.mrb[25].mxu0 }
 0xf92   :  { %v2818_v20 = vsel %vm5493_vm7, %v2810_v17, -1e+30 }
 0xf93   :  { %v2801_v21 = vpop.f32.mrb[26].mxu0  ;;  %v2836_v23 = vsel %vm342_vm6, %v2818_v20, -inf }
 0xf94   :  { %v2812_v24 = vmul.f32 0.35355338, %v2801_v21  ;;  %2840 = vmax.xlane.f32.xlu1 %v2839_v22  ;;  %2837 = vmax.xlane.f32.xlu0 %v2836_v23  ;;  %v4750_v25 = vpop.f32.mrb[27].mxu0 }
 0xf96   :  { %v2820_v26 = vsel %vm5493_vm7, %v2812_v24, -1e+30 }
 0xf97   :  { %v2842_v27 = vsel %vm342_vm6, %v2820_v26, -inf }
 0xf98   :  { %2843 = vmax.xlane.f32.xlu0 %v2842_v27 }
 0xfa5   :  { %2909 = vrot.lane.b32.xlu1 %v5757_v33, %s5153_s27 }
 0xfa9   :  { %3061 = vrot.lane.b32.xlu1 %v5779_v35, %s5153_s27  ;;  %v2823_v29 = vpop.xlane.xlu0 %2822 }
 0xfaa   :  { %v2845_v30 = vsub.f32 %v2813_v54, %v2823_v29 }
 0xfac   :  { %v2853_v33 = vmul.f32 1.442695, %v2845_v30 }
 0xfad   :  { %3137 = vrot.lane.b32.xlu1 %v5775_v34, %s5153_s27 }
 0xfae   :  { %2985 = vrot.lane.b32.xlu0 %v5755_v31, %s5153_s27 }
 0xfb1   :  { %3289 = vrot.lane.b32.xlu1 %v5790_v37, %s5153_s27 }
 0xfb2   :  { %3213 = vrot.lane.b32.xlu0 %v5785_v36, %s5153_s27  ;;  %v2826_v59 = vpop.xlane.xlu1 %2825 }
 0xfb3   :  { %v2846_v45 = vsub.f32 %v2814_v63, %v2826_v59 }
 0xfb5   :  { %v2855_v32 = vmul.f32 1.442695, %v2846_v45 }
 0xfb7   :  { %5101 = vpow2.f32 %v2855_v32 }
 0xfb8   :  { %5103 = vpow2.f32 %v2853_v33 }
 0xfc1   :  { %v5883_v35 = vpop.eup %5101 }
 0xfc2   :  { %v2872_v34 = vsel %vm342_vm6, %v5883_v35, 0.0  ;;  %v5887_v31 = vpop.eup %5103 }
 0xfc3   :  { %v2869_v61 = vsel %vm342_vm6, %v5887_v31, 0.0 }
 0xfd1   :  { %2873 = vadd.xlane.f32.xlu0 %v2872_v34 }
 0xfd5   :  { %2870 = vadd.xlane.f32.xlu1 %v2869_v61 }
0x1015   :  { %v2829_v36 = vpop.xlane.xlu0 %2828 }
0x1016   :  { %v2847_v37 = vsub.f32 %v2815_v5, %v2829_v36 }
0x1018   :  { %v2857_v48 = vmul.f32 1.442695, %v2847_v37 }
0x1019   :  { %v2832_v39 = vpop.xlane.xlu0 %2831 }
0x101a   :  { %5105 = vpow2.f32 %v2857_v48  ;;  %v2848_v49 = vsub.f32 %v2816_v6, %v2832_v39 }
0x101c   :  { %v2859_v42 = vmul.f32 1.442695, %v2848_v49 }
0x101d   :  { %v2835_v40 = vpop.xlane.xlu1 %2834 }
0x101e   :  { %5107 = vpow2.f32 %v2859_v42  ;;  %v2849_v43 = vsub.f32 %v2817_v14, %v2835_v40  ;;  %v4270_v40 = vld [vmem:[%s6208_s7 + $0x20] sm:$0xff] }
0x1020   :  { %v2861_v57 = vmul.f32 1.442695, %v2849_v43  ;;  %v4271_v43 = vld [vmem:[%s6208_s7 + $0x28] sm:$0xff] }
0x1021   :  { %v2838_v44 = vpop.xlane.xlu0 %2837  ;;  %v2841_v46 = vpop.xlane.xlu1 %2840 }
0x1022   :  { %v2850_v50 = vsub.f32 %v2818_v20, %v2838_v44  ;;  %v2851_v53 = vsub.f32 %v2819_v19, %v2841_v46  ;;  %v4944_v44 = vpack.c.bf16 %v4271_v43, %v4270_v40  ;;  %v4280_v40 = vld [vmem:[%s6212_s9 + $0x1] ss:$0 sm:$0xff] }
0x1024   :  { %v5106_v54 = vpop.eup %5105  ;;  %v2863_v55 = vmul.f32 1.442695, %v2850_v50  ;;  %v2865_v56 = vmul.f32 1.442695, %v2851_v53  ;;  %v4272_v53 = vld [vmem:[%s6208_s7 + $0x30] sm:$0xff] }
0x1025   :  { %v2844_v62 = vpop.xlane.xlu0 %2843  ;;  %v2910_v63 = vpop.permute.xlu1 %2909  ;;  %v2875_v0 = vsel %vm342_vm6, %v5106_v54, 0.0 }
0x1026   :  { %5109 = vpow2.f32 %v2863_v55  ;;  %v2852_v1 = vsub.f32 %v2820_v26, %v2844_v62  ;;  %2876 = vadd.xlane.f32.xlu1 %v2875_v0  ;;  %4752 = vmatpush3.msra.mxu1 %v2910_v63 }
0x1027   :  { %5111 = vpow2.f32 %v2865_v56  ;;  %4761 = vmatprep.subr.mxu1 %v5149_v41 }
0x1028   :  { %v5108_v3 = vpop.eup %5107  ;;  %v2867_v4 = vmul.f32 1.442695, %v2852_v1  ;;  %5113 = vpow2.f32 %v2861_v57 }
0x1029   :  { %v2986_v5 = vpop.permute.xlu0 %2985  ;;  %v2878_v47 = vsel %vm342_vm6, %v5108_v3, 0.0  ;;  %v3062_v11 = vpop.permute.xlu1 %3061 }
0x102a   :  { %5115 = vpow2.f32 %v2867_v4  ;;  %4757 = vmatpush3.msra.mxu0 %v2986_v5  ;;  %2879 = vadd.xlane.f32.xlu0 %v2878_v47 }
0x102b   :  { %4766 = vmatprep.subr.mxu0 %v5149_v41 }
0x102d   :  { %v3138_v12 = vpop.permute.xlu1 %3137  ;;  %v3214_v13 = vpop.permute.xlu0 %3213 }
0x1030   :  { %v5110_v51 = vpop.eup %5109 }
0x1031   :  { %v5895_v52 = vpop.eup %5111  ;;  %v2884_v28 = vsel %vm342_vm6, %v5110_v51, 0.0  ;;  %v3290_v14 = vpop.permute.xlu1 %3289 }
0x1032   :  { %2885 = vadd.xlane.f32.xlu0 %v2884_v28  ;;  %v2887_v6 = vsel %vm342_vm6, %v5895_v52, 0.0  ;;  %v5114_v7 = vpop.eup %5113 }
0x1033   :  { %2888 = vadd.xlane.f32.xlu1 %v2887_v6  ;;  %v2881_v10 = vsel %vm342_vm6, %v5114_v7, 0.0 }
0x1034   :  { %v5116_v8 = vpop.eup %5115 }
0x1035   :  { %v2890_v9 = vsel %vm342_vm6, %v5116_v8, 0.0 }
0x1036   :  { %2891 = vadd.xlane.f32.xlu0 %v2890_v9 }
0x1037   :  { %2882 = vadd.xlane.f32.xlu1 %v2881_v10 }
0x1048   :  { %3441 = vrot.lane.b32.xlu1 %v5799_v38, %s5153_s27 }
0x104c   :  { %3365 = vrot.lane.b32.xlu0 %v5783_v2, %s5153_s27 }
0x105e   :  { %v2874_v15 = vpop.xlane.xlu0 %2873 }
0x105f   :  { %5117 = vrcp.f32 %v2874_v15 }
0x1062   :  { %v2871_v16 = vpop.xlane.xlu1 %2870 }
0x1063   :  { %5119 = vrcp.f32 %v2871_v16 }
0x1069   :  { %v5118_v17 = vpop.eup %5117 }
0x106a   :  { %v2902_v18 = vmul.f32 %v5118_v17, %v5883_v35 }
0x106c   :  { %4759 = vmatmul.mubr.msk.f32.vlgmr.msra.gmra.mrb[28].mxu0 %vm342_vm6, %v2902_v18 }
0x106d   :  { %v5120_v19 = vpop.eup %5119  ;;  %4767 = vmatpush3.msra.mxu0 %v3138_v12  ;;  %4768 = vmatprep.mubr.msk.f32.mxu0 %vm5151_vm5, %v5149_v41 }
0x106e   :  { %v2901_v2 = vmul.f32 %v5120_v19, %v5887_v31  ;;  %4776 = vmatprep.subr.mxu0 %v5149_v41 }
0x1070   :  { %4754 = vmatmul.mubr.msk.f32.vlgmr.msra.gmra.mrb[34].mxu1 %vm342_vm6, %v2901_v2 }
0x1071   :  { %4762 = vmatpush3.msra.mxu1 %v3062_v11  ;;  %4763 = vmatprep.mubr.msk.f32.mxu1 %vm5151_vm5, %v5149_v41 }
0x1072   :  { %4771 = vmatprep.subr.mxu1 %v5149_v41 }
0x10b3   :  { %v2877_v38 = vpop.xlane.xlu1 %2876 }
0x10b4   :  { %5121 = vrcp.f32 %v2877_v38 }
0x10b7   :  { %v2880_v20 = vpop.xlane.xlu0 %2879 }
0x10b8   :  { %5123 = vrcp.f32 %v2880_v20 }
0x10be   :  { %v5122_v21 = vpop.eup %5121 }
0x10bf   :  { %v2903_v22 = vmul.f32 %v5122_v21, %v5106_v54  ;;  %v2886_v23 = vpop.xlane.xlu0 %2885  ;;  %v4273_v54 = vld [vmem:[%s6208_s7 + $0x38] sm:$0xff] }
0x10c0   :  { %5125 = vrcp.f32 %v2886_v23  ;;  %v2889_v24 = vpop.xlane.xlu1 %2888  ;;  %v4948_v55 = vpack.c.bf16 %v4273_v54, %v4272_v53 }
0x10c1   :  { %4764 = vmatmul.mubr.msk.f32.vlgmr.msra.gmra.mrb[36].mxu1 %vm342_vm6, %v2903_v22 }
0x10c2   :  { %v5124_v25 = vpop.eup %5123  ;;  %4772 = vmatpush3.msra.mxu1 %v3214_v13  ;;  %4773 = vmatprep.mubr.msk.f32.mxu1 %vm5151_vm5, %v5149_v41  ;;  %v4275_v13 = vld [vmem:[%s6209_s8 + $0x1] ss:$0 sm:$0xff] }
0x10c3   :  { %v2904_v26 = vmul.f32 %v5124_v25, %v5108_v3  ;;  %v2892_v27 = vpop.xlane.xlu0 %2891  ;;  %4781 = vmatprep.subr.mxu1 %v5149_v41 }
0x10c4   :  { %5127 = vrcp.f32 %v2892_v27  ;;  %v2883_v59 = vpop.xlane.xlu1 %2882 }
0x10c5   :  { %5129 = vrcp.f32 %v2883_v59  ;;  %4769 = vmatmul.mubr.msk.f32.vlgmr.msra.gmra.mrb[30].mxu0 %vm342_vm6, %v2904_v26  ;;  %v4282_v59 = vld [vmem:[%s6210_s11 + $0x20] sm:$0xff] }
0x10c6   :  { %4777 = vmatpush3.msra.mxu0 %v3290_v14  ;;  %4778 = vmatprep.mubr.msk.f32.mxu0 %vm5151_vm5, %v5149_v41  ;;  %5131 = vrcp.f32 %v2889_v24 }
0x10c7   :  { %4786 = vmatprep.subr.mxu0 %v5149_v41  ;;  %v3366_v61 = vpop.permute.xlu0 %3365 }
0x10c8   :  { %v3442_v30 = vpop.permute.xlu1 %3441 }
0x10ca   :  { %v5126_v45 = vpop.eup %5125 }
0x10cb   :  { %v2906_v29 = vmul.f32 %v5126_v45, %v5110_v51  ;;  %v4283_v45 = vld [vmem:[%s6210_s11 + $0x28] sm:$0xff] }
0x10cd   :  { %4779 = vmatmul.mubr.msk.f32.vlgmr.msra.gmra.mrb[32].mxu0 %vm342_vm6, %v2906_v29  ;;  %v4952_v29 = vpack.c.bf16 %v4283_v45, %v4282_v59 }
0x10ce   :  { %v5128_v32 = vpop.eup %5127  ;;  %4787 = vmatpush3.msra.mxu0 %v3442_v30  ;;  %4788 = vmatprep.mubr.msk.f32.mxu0 %vm5151_vm5, %v5149_v41  ;;  %v4284_v30 = vld [vmem:[%s6210_s11 + $0x30] sm:$0xff] }
0x10cf   :  { %v5130_v33 = vpop.eup %5129  ;;  %v2908_v35 = vmul.f32 %v5128_v32, %v5116_v8  ;;  %4953 = vmatprep.subr.bf16.mxu0 %v4952_v29  ;;  %v4285_v32 = vld [vmem:[%s6210_s11 + $0x38] sm:$0xff] }
0x10d0   :  { %v2905_v34 = vmul.f32 %v5130_v33, %v5114_v7  ;;  %v5132_v31 = vpop.eup %5131  ;;  %v4956_v33 = vpack.c.bf16 %v4285_v32, %v4284_v30 }
0x10d1   :  { %4789 = vmatmul.mubr.msk.f32.vlgmr.msra.gmra.mrb[34].mxu0 %vm342_vm6, %v2908_v35  ;;  %v2907_v36 = vmul.f32 %v5132_v31, %v5895_v52  ;;  %v4290_v35 = vld [vmem:[%s6211_s13 + $0x80] sm:$0xff] }
0x10d2   :  { %4774 = vmatmul.mubr.msk.f32.vlgmr.msra.gmra.mrb[38].mxu1 %vm342_vm6, %v2905_v34  ;;  %4955 = vmatpush3.bf16.msra.mxu0 %v4952_v29  ;;  %v4291_v34 = vld [vmem:[%s6211_s13 + $0x88] sm:$0xff] }
0x10d3   :  { %4782 = vmatpush3.msra.mxu1 %v3366_v61  ;;  %4783 = vmatprep.mubr.msk.f32.mxu1 %vm5151_vm5, %v5149_v41  ;;  %v4960_v31 = vpack.c.bf16 %v4291_v34, %v4290_v35  ;;  %v4307_v34 = vld [vmem:[%s6215_s14 + $0x1] ss:$0 sm:$0xff] }
0x10d4   :  { %4945 = vmatprep.subr.bf16.mxu1 %v4944_v44  ;;  %4957 = vmatprep.subr.bf16.mxu0 %v4956_v33 }
0x10d6   :  { %4784 = vmatmul.mubr.msk.f32.vlgmr.msra.gmra.mrb[40].mxu1 %vm342_vm6, %v2907_v36  ;;  %4959 = vmatpush3.bf16.msra.mxu0 %v4956_v33 }
0x10d7   :  { %4947 = vmatpush3.bf16.msra.mxu1 %v4944_v44 }
0x10d8   :  { %4949 = vmatprep.subr.bf16.mxu1 %v4948_v55 }
0x10db   :  { %4951 = vmatpush3.bf16.msra.mxu1 %v4948_v55 }
0x10dc   :  { %4961 = vmatprep.subr.bf16.mxu1 %v4960_v31 }
0x113f   :  { %v3057_v37 = vpop.f32.mrb[28].mxu0 }
0x1140   :  { %v4760_v48 = vpop.f32.mrb[29].mxu0 }
0x1143   :  { %v2981_v39 = vpop.f32.mrb[34].mxu1 }
0x1144   :  { %v4755_v49 = vpop.f32.mrb[35].mxu1 }
0x1194   :  { %v3133_v42 = vpop.f32.mrb[36].mxu1 }
0x1195   :  { %3519 = vrot.lane.b32.xlu0 %v3133_v42, %s6233_s25  ;;  %v4765_v41 = vpop.f32.mrb[37].mxu1 }
0x1196   :  { %v4281_v41 = vld [vmem:[%s6213_s10 + $0x1] ss:$0 sm:$0xff] }
0x1198   :  { %v3209_v46 = vpop.f32.mrb[30].mxu0 }
0x1199   :  { %3521 = vrot.lane.b32.xlu1 %v3209_v46, %s6233_s25  ;;  %v4770_v50 = vpop.f32.mrb[31].mxu0 }
0x11a0   :  { %v3361_v56 = vpop.f32.mrb[32].mxu0 }
0x11a1   :  { %3529 = vrot.lane.b32.xlu1 %v3361_v56, %s6234_s0  ;;  %v4780_v57 = vpop.f32.mrb[33].mxu0  ;;  %v4292_v56 = vld [vmem:[%s6211_s13 + $0x90] sm:$0xff] }
0x11a2   :  { %v4293_v57 = vld [vmem:[%s6211_s13 + $0x98] sm:$0xff] }
0x11a4   :  { %v3513_v62 = vpop.f32.mrb[34].mxu0 }
0x11a5   :  { %v3285_v63 = vpop.f32.mrb[38].mxu1  ;;  %3537 = vrot.lane.b32.xlu1 %v3513_v62, %s6235_s18  ;;  %v4790_v0 = vpop.f32.mrb[35].mxu0  ;;  %v4964_v62 = vpack.c.bf16 %v4293_v57, %v4292_v56  ;;  %v3971_v56 = vld [vmem:[%s6230_s30 + $0x10] sm:$0xff]  ;;  %v3972_v57 = vld [vmem:[%s6230_s30 + $0x18] sm:$0xff] }
0x11a6   :  { %3527 = vrot.lane.b32.xlu0 %v3285_v63, %s6234_s0  ;;  %v4775_v1 = vpop.f32.mrb[39].mxu1  ;;  %v4294_v63 = vld [vmem:[%s6211_s13 + $0xa0] sm:$0xff]  ;;  %v4295_v0 = vld [vmem:[%s6211_s13 + $0xa8] sm:$0xff] }
0x11a7   :  { %v4968_v1 = vpack.c.bf16 %v4295_v0, %v4294_v63  ;;  %v3990_v63 = vld [vmem:[%s6230_s30 + $0xa8] sm:$0xff]  ;;  %v5001_v0 = vpack.c.bf16 %v3972_v57, %v3971_v56 }
0x11a9   :  { %v3437_v3 = vpop.f32.mrb[40].mxu1 }
0x11aa   :  { %3535 = vrot.lane.b32.xlu0 %v3437_v3, %s6235_s18  ;;  %v4785_v4 = vpop.f32.mrb[41].mxu1  ;;  %v4296_v3 = vld [vmem:[%s6211_s13 + $0xb0] sm:$0xff] }
0x11ab   :  { %v4297_v4 = vld [vmem:[%s6211_s13 + $0xb8] sm:$0xff] }
0x1207   :  { %v3520_v47 = vpop.permute.xlu0 %3519 }
0x1208   :  { %v3541_v28 = vsel %vm342_vm6, %v2981_v39, %v3520_v47  ;;  %v4298_v47 = vld [vmem:[%s6211_s13 + $0xc0] sm:$0xff] }
0x120b   :  { %v3522_v5 = vpop.permute.xlu1 %3521 }
0x120c   :  { %v3542_v7 = vsel %vm342_vm6, %v3057_v37, %v3522_v5  ;;  %v4972_v5 = vpack.c.bf16 %v4297_v4, %v4296_v3  ;;  %v3973_v3 = vld [vmem:[%s6230_s30 + $0x20] sm:$0xff]  ;;  %v3974_v4 = vld [vmem:[%s6230_s30 + $0x28] sm:$0xff] }
0x1213   :  { %v3530_v51 = vpop.permute.xlu1 %3529 }
0x1214   :  { %v3544_v10 = vsel %vm1689_vm8, %v3542_v7, %v3530_v51  ;;  %v4299_v51 = vld [vmem:[%s6211_s13 + $0xc8] sm:$0xff] }
0x1217   :  { %v3538_v6 = vpop.permute.xlu1 %3537 }
0x1218   :  { %v3528_v52 = vpop.permute.xlu0 %3527  ;;  %v3546_v12 = vsel %vm1692_vm9, %v3544_v10, %v3538_v6  ;;  %v4301_v6 = vld [vmem:[%s6211_s13 + $0xd8] sm:$0xff] }
0x1219   :  { %v3543_v8 = vsel %vm1689_vm8, %v3541_v28, %v3528_v52  ;;  %v4976_v52 = vpack.c.bf16 %v4299_v51, %v4298_v47  ;;  %v4300_v28 = vld [vmem:[%s6211_s13 + $0xd0] sm:$0xff]  ;;  %v3992_v47 = vld [vmem:[%s6230_s30 + $0xb8] sm:$0xff]  ;;  %v5007_v51 = vpack.c.bf16 %v3974_v4, %v3973_v3 }
0x121a   :  { %v4980_v7 = vpack.c.bf16 %v4301_v6, %v4300_v28  ;;  %v3975_v28 = vld [vmem:[%s6230_s30 + $0x30] sm:$0xff]  ;;  %v3976_v6 = vld [vmem:[%s6230_s30 + $0x38] sm:$0xff] }
0x121c   :  { %v3536_v9 = vpop.permute.xlu0 %3535 }
0x121d   :  { %v3545_v11 = vsel %vm1692_vm9, %v3543_v8, %v3536_v9  ;;  %v4302_v8 = vld [vmem:[%s6211_s13 + $0xe0] sm:$0xff]  ;;  %v4303_v9 = vld [vmem:[%s6211_s13 + $0xe8] sm:$0xff] }
0x121e   :  { %4799 = vmatprep.mubr.msk.f32.mxu1 %vm190_vm4, %v3545_v11  ;;  %v4984_v10 = vpack.c.bf16 %v4303_v9, %v4302_v8  ;;  %v4304_v11 = vld [vmem:[%s6211_s13 + $0xf0] sm:$0xff] }
0x121f   :  { %4800 = vmatmul.mubr.msk.f32.vlgmr.msra.gmra.mrb[42].mxu1 %vm190_vm4, %v3546_v12  ;;  %v4305_v12 = vld [vmem:[%s6211_s13 + $0xf8] sm:$0xff] }
0x1220   :  { %4963 = vmatpush3.bf16.msra.mxu1 %v4960_v31 }
0x1221   :  { %4965 = vmatprep.subr.bf16.mxu1 %v4964_v62 }
0x1224   :  { %4967 = vmatpush3.bf16.msra.mxu1 %v4964_v62  ;;  %v3989_v62 = vld [vmem:[%s6230_s30 + $0xa0] sm:$0xff] }
0x1225   :  { %4969 = vmatprep.subr.bf16.mxu1 %v4968_v1 }
0x1228   :  { %4971 = vmatpush3.bf16.msra.mxu1 %v4968_v1  ;;  %v5004_v1 = vpack.c.bf16 %v3990_v63, %v3989_v62 }
0x1229   :  { %4973 = vmatprep.subr.bf16.mxu1 %v4972_v5 }
0x122c   :  { %4975 = vmatpush3.bf16.msra.mxu1 %v4972_v5  ;;  %v3991_v5 = vld [vmem:[%s6230_s30 + $0xb0] sm:$0xff] }
0x122d   :  { %4977 = vmatprep.subr.bf16.mxu1 %v4976_v52 }
0x1230   :  { %4979 = vmatpush3.bf16.msra.mxu1 %v4976_v52  ;;  %v5010_v52 = vpack.c.bf16 %v3992_v47, %v3991_v5 }
0x1231   :  { %4981 = vmatprep.subr.bf16.mxu1 %v4980_v7 }
0x1234   :  { %4983 = vmatpush3.bf16.msra.mxu1 %v4980_v7  ;;  %v5013_v7 = vpack.c.bf16 %v3976_v6, %v3975_v28 }
0x1235   :  { %4985 = vmatprep.subr.bf16.mxu1 %v4984_v10 }
0x1238   :  { %4987 = vmatpush3.bf16.msra.mxu1 %v4984_v10 }
0x12f2   :  { %v4801_v14 = vpop.f32.mrb[42].mxu1 }
0x12f3   :  { %v3638_v15 = vadd.f32 %v4801_v14, %v4275_v13  ;;  %v3632_v16 = vpop.f32.mrb[43].mxu1  ;;  %v4287_v14 = vld [vmem:[%s6214_s12 + $0x1] ss:$0 sm:$0xff] }
0x12f4   :  { %v3633_v17 = vadd.f32 %v4275_v13, %v3632_v16  ;;  %v4988_v13 = vpack.c.bf16 %v4305_v12, %v4304_v11 }
0x12f5   :  { %v5963_v18 = vadd.f32 %v3638_v15, %v5716_v58 }
0x12f6   :  { %v5966_v19 = vadd.f32 %v3633_v17, %v5719_v60  ;;  %4989 = vmatprep.subr.bf16.mxu1 %v4988_v13 }
0x12f7   :  { %v3650_v2 = vsel %vm190_vm4, %v5963_v18, 0.0  ;;  %4991 = vmatpush3.bf16.msra.mxu1 %v4988_v13 }
0x12f8   :  { %3651 = vadd.xlane.f32.xlu1 %v3650_v2  ;;  %v3647_v38 = vsel %vm190_vm4, %v5966_v19, 0.0 }
0x12f9   :  { %3648 = vadd.xlane.f32.xlu0 %v3647_v38 }
0x1385   :  { %v3652_v20 = vpop.xlane.xlu1 %3651 }
0x1386   :  { %v3654_v21 = vmul.f32 0.03125, %v3652_v20  ;;  %v3649_v22 = vpop.xlane.xlu0 %3648 }
0x1387   :  { %v3653_v23 = vmul.f32 0.03125, %v3649_v22 }
0x1388   :  { %v3656_v24 = vsub.f32 %v5963_v18, %v3654_v21 }
0x1389   :  { %v3655_v58 = vsub.f32 %v5966_v19, %v3653_v23 }
0x138a   :  { %v3658_v26 = vmul.f32 %v3656_v24, %v3656_v24 }
0x138b   :  { %v3657_v25 = vmul.f32 %v3655_v58, %v3655_v58 }
0x138c   :  { %v3662_v27 = vsel %vm190_vm4, %v3658_v26, 0.0 }
0x138d   :  { %v3659_v60 = vsel %vm190_vm4, %v3657_v25, 0.0 }
0x138e   :  { %3660 = vadd.xlane.f32.xlu0 %v3659_v60 }
0x1392   :  { %3663 = vadd.xlane.f32.xlu0 %v3662_v27 }
0x141b   :  { %v3661_v61 = vpop.xlane.xlu0 %3660 }
0x141c   :  { %v3665_v36 = vmul.f32 0.03125, %v3661_v61 }
0x141e   :  { %v3667_v37 = vadd.f32 1e-05, %v3665_v36 }
0x141f   :  { %v3664_v48 = vpop.xlane.xlu0 %3663 }
0x1420   :  { %5133 = vrsqrt.f32 %v3667_v37  ;;  %v3666_v39 = vmul.f32 0.03125, %v3664_v48 }
0x1422   :  { %v3668_v49 = vadd.f32 1e-05, %v3666_v39 }
0x1424   :  { %5135 = vrsqrt.f32 %v3668_v49 }
0x142a   :  { %v5134_v42 = vpop.eup %5133 }
0x142b   :  { %v3671_v43 = vmul.f32 %v5134_v42, %v3655_v58 }
0x142d   :  { %v3679_v44 = vmul.f32 %v4280_v40, %v3671_v43  ;;  %v3985_v43 = vld [vmem:[%s6230_s30 + $0x80] sm:$0xff] }
0x142e   :  { %v5136_v46 = vpop.eup %5135 }
0x142f   :  { %v3672_v50 = vmul.f32 %v5136_v46, %v3656_v24  ;;  %v3687_v53 = vadd.f32 %v4281_v41, %v3679_v44  ;;  %v3969_v44 = vld [vmem:[%s6230_s30] sm:$0xff]  ;;  %v3970_v46 = vld [vmem:[%s6230_s30 + $0x8] sm:$0xff] }
0x1431   :  { %v3680_v54 = vmul.f32 %v4280_v40, %v3672_v50  ;;  %4810 = vmatprep.mubr.msk.f32.mxu0 %vm190_vm4, %v3687_v53  ;;  %v3987_v50 = vld [vmem:[%s6230_s30 + $0x90] sm:$0xff]  ;;  %v4995_v53 = vpack.c.bf16 %v3970_v46, %v3969_v44 }
0x1433   :  { %v3688_v55 = vadd.f32 %v4281_v41, %v3680_v54  ;;  %v3986_v41 = vld [vmem:[%s6230_s30 + $0x88] sm:$0xff]  ;;  %v3988_v54 = vld [vmem:[%s6230_s30 + $0x98] sm:$0xff] }
0x1435   :  { %4811 = vmatmul.mubr.msk.f32.vlgmr.msra.gmra.mrb[36].mxu0 %vm190_vm4, %v3688_v55  ;;  %v4998_v55 = vpack.c.bf16 %v3988_v54, %v3987_v50  ;;  %v4308_v50 = vld [vmem:[%s6216_s15] ss:$0 sm:$0xff] }
0x1508   :  { %v4812_v15 = vpop.f32.mrb[36].mxu0 }
0x1509   :  { %v3780_v16 = vadd.f32 %v4812_v15, %v4287_v14  ;;  %v3774_v17 = vpop.f32.mrb[37].mxu0 }
0x150a   :  { %v3775_v2 = vadd.f32 %v4287_v14, %v3774_v17 }
0x150b   :  { %v3786_v38 = vmul.f32 0.044715, %v3780_v16  ;;  %v3784_v32 = vmul.f32 0.5, %v3780_v16 }
0x150c   :  { %v3785_v20 = vmul.f32 0.044715, %v3775_v2  ;;  %v3783_v29 = vmul.f32 0.5, %v3775_v2 }
0x150d   :  { %v3788_v21 = vmul.f32 %v3786_v38, %v3780_v16 }
0x150e   :  { %v3787_v22 = vmul.f32 %v3785_v20, %v3775_v2  ;;  %v3993_v20 = vld [vmem:[%s6230_s30 + $0xc0] sm:$0xff] }
0x150f   :  { %v3790_v23 = vmul.f32 %v3788_v21, %v3780_v16  ;;  %v3994_v21 = vld [vmem:[%s6230_s30 + $0xc8] sm:$0xff] }
0x1510   :  { %v3789_v24 = vmul.f32 %v3787_v22, %v3775_v2  ;;  %v5016_v22 = vpack.c.bf16 %v3994_v21, %v3993_v20 }
0x1511   :  { %v3792_v58 = vadd.f32 %v3790_v23, %v3780_v16  ;;  %v3977_v23 = vld [vmem:[%s6230_s30 + $0x40] sm:$0xff] }
0x1512   :  { %v3791_v25 = vadd.f32 %v3789_v24, %v3775_v2  ;;  %v3978_v24 = vld [vmem:[%s6230_s30 + $0x48] sm:$0xff] }
0x1513   :  { %v3794_v60 = vmul.f32 0.7978846, %v3792_v58  ;;  %v5019_v58 = vpack.c.bf16 %v3978_v24, %v3977_v23 }
0x1514   :  { %v3793_v26 = vmul.f32 0.7978846, %v3791_v25  ;;  %v3995_v25 = vld [vmem:[%s6230_s30 + $0xd0] sm:$0xff] }
0x1515   :  { %5137 = vtanh.f32 %v3794_v60  ;;  %v3996_v60 = vld [vmem:[%s6230_s30 + $0xd8] sm:$0xff] }
0x1516   :  { %5139 = vtanh.f32 %v3793_v26  ;;  %v5022_v26 = vpack.c.bf16 %v3996_v60, %v3995_v25 }
0x151f   :  { %v5138_v27 = vpop.eup %5137 }
0x1520   :  { %v5140_v59 = vpop.eup %5139  ;;  %v3798_v45 = vadd.f32 1.0, %v5138_v27  ;;  %v3979_v27 = vld [vmem:[%s6230_s30 + $0x50] sm:$0xff] }
0x1521   :  { %v3797_v30 = vadd.f32 1.0, %v5140_v59  ;;  %v3980_v59 = vld [vmem:[%s6230_s30 + $0x58] sm:$0xff] }
0x1522   :  { %v3800_v35 = vmul.f32 %v3798_v45, %v3784_v32  ;;  %v5025_v45 = vpack.c.bf16 %v3980_v59, %v3979_v27 }
0x1523   :  { %v3799_v33 = vmul.f32 %v3797_v30, %v3783_v29  ;;  %v3997_v29 = vld [vmem:[%s6230_s30 + $0xe0] sm:$0xff]  ;;  %v3998_v30 = vld [vmem:[%s6230_s30 + $0xe8] sm:$0xff] }
0x1524   :  { %v5028_v32 = vpack.c.bf16 %v3998_v30, %v3997_v29 }
0x1525   :  { %4845 = vmatprep.mubr.f32.mxu1 %v3799_v33  ;;  %v3981_v33 = vld [vmem:[%s6230_s30 + $0x60] sm:$0xff] }
0x1526   :  { %4846 = vmatmul.mubr.f32.vlgmr.msra.gmra.mrb[44].mxu1 %v3800_v35  ;;  %v3982_v35 = vld [vmem:[%s6230_s30 + $0x68] sm:$0xff] }
0x15f9   :  { %v4847_v31 = vpop.f32.mrb[44].mxu1 }
0x15fa   :  { %v3898_v61 = vadd.f32 %v4847_v31, %v4307_v34  ;;  %v3892_v36 = vpop.f32.mrb[45].mxu1  ;;  %v3999_v31 = vld [vmem:[%s6230_s30 + $0xf0] sm:$0xff] }
0x15fb   :  { %v3893_v37 = vadd.f32 %v4307_v34, %v3892_v36  ;;  %v5031_v34 = vpack.c.bf16 %v3982_v35, %v3981_v33 }
0x15fc   :  { %v3902_v48 = vadd.f32 %v3898_v61, %v5963_v18  ;;  %v4000_v61 = vld [vmem:[%s6230_s30 + $0xf8] sm:$0xff]  ;;  %v4309_v18 = vld [vmem:[%s6217_s16] ss:$0 sm:$0xff] }
0x15fd   :  { %v3901_v39 = vadd.f32 %v3893_v37, %v5966_v19  ;;  %v4992_v19 = vpack.c.bf16 %v3986_v41, %v3985_v43  ;;  %v5034_v36 = vpack.c.bf16 %v4000_v61, %v3999_v31  ;;  %v3983_v37 = vld [vmem:[%s6230_s30 + $0x70] sm:$0xff] }
0x15fe   :  { %v3907_v49 = vrot.slane %v3902_v48, 7 }
0x15ff   :  { %v3911_v42 = vsel %vm3910_vm10, %v3901_v39, 0.0  ;;  %4994 = vmatprep.subr.msk.bf16.mxu0 %vm6062_vm12, %v4992_v19 }
0x1600   :  { %3912 = vadd.xlane.f32.xlu0 %v3911_v42  ;;  %v3915_v40 = vsel %vm3914_vm11, %v3907_v49, 0.0  ;;  %4997 = vmatpush3.bf16.xpose.msk.msra.mxu0 %vm6062_vm12, %v4995_v53 }
0x1601   :  { %3916 = vadd.xlane.f32.xlu1 %v3915_v40  ;;  %5000 = vmatprep.subr.msk.bf16.mxu0 %vm6062_vm12, %v4998_v55 }
0x1608   :  { %5003 = vmatpush3.bf16.xpose.msk.msra.mxu0 %vm6062_vm12, %v5001_v0 }
0x1609   :  { %5006 = vmatprep.subr.msk.bf16.mxu0 %vm6062_vm12, %v5004_v1 }
0x1610   :  { %5009 = vmatpush3.bf16.xpose.msk.msra.mxu0 %vm6062_vm12, %v5007_v51 }
0x1611   :  { %5012 = vmatprep.subr.msk.bf16.mxu0 %vm6062_vm12, %v5010_v52 }
0x1618   :  { %5015 = vmatpush3.bf16.xpose.msk.msra.mxu0 %vm6062_vm12, %v5013_v7 }
0x1619   :  { %5018 = vmatprep.subr.msk.bf16.mxu0 %vm6062_vm12, %v5016_v22 }
0x1620   :  { %5021 = vmatpush3.bf16.xpose.msk.msra.mxu0 %vm6062_vm12, %v5019_v58 }
0x1621   :  { %5024 = vmatprep.subr.msk.bf16.mxu0 %vm6062_vm12, %v5022_v26 }
0x1628   :  { %5027 = vmatpush3.bf16.xpose.msk.msra.mxu0 %vm6062_vm12, %v5025_v45 }
0x1629   :  { %5030 = vmatprep.subr.msk.bf16.mxu0 %vm6062_vm12, %v5028_v32 }
0x1630   :  { %5033 = vmatpush3.bf16.xpose.msk.msra.mxu0 %vm6062_vm12, %v5031_v34 }
0x1631   :  { %5036 = vmatprep.subr.msk.bf16.mxu0 %vm6062_vm12, %v5034_v36 }
0x168d   :  { %v3913_v8 = vpop.xlane.xlu0 %3912 }
0x168e   :  { %v3918_v9 = vmul.f32 0.03125, %v3913_v8  ;;  %v3917_v10 = vpop.xlane.xlu1 %3916 }
0x168f   :  { %v3919_v11 = vmul.f32 0.03125, %v3917_v10 }
0x1690   :  { %v3925_v12 = vsub.f32 %v3901_v39, %v3918_v9 }
0x1691   :  { %v3922_v13 = vrot.slane %v3919_v11, 1 }
0x1692   :  { %v3927_v14 = vmul.f32 %v3925_v12, %v3925_v12 }
0x1693   :  { %v3926_v15 = vsub.f32 %v3902_v48, %v3922_v13  ;;  %v3984_v48 = vld [vmem:[%s6230_s30 + $0x78] sm:$0xff] }
0x1694   :  { %v3934_v16 = vsel %vm3910_vm10, %v3927_v14, 0.0  ;;  %v5037_v39 = vpack.c.bf16 %v3984_v48, %v3983_v37 }
0x1695   :  { %3935 = vadd.xlane.f32.xlu0 %v3934_v16  ;;  %v3928_v17 = vmul.f32 %v3926_v15, %v3926_v15 }
0x1696   :  { %5039 = vmatpush3.bf16.xpose.msk.msra.mxu0 %vm6062_vm12, %v5037_v39 }
0x1697   :  { %v3931_v2 = vrot.slane %v3928_v17, 7 }
0x1699   :  { %v3937_v38 = vsel %vm3914_vm11, %v3931_v2, 0.0 }
0x169a   :  { %3938 = vadd.xlane.f32.xlu1 %v3937_v38 }
0x1722   :  { %v3936_v49 = vpop.xlane.xlu0 %3935 }
0x1723   :  { %v3940_v42 = vmul.f32 0.03125, %v3936_v49 }
0x1725   :  { %v3942_v40 = vadd.f32 1e-05, %v3940_v42 }
0x1727   :  { %5141 = vrsqrt.f32 %v3942_v40  ;;  %v3939_v43 = vpop.xlane.xlu1 %3938 }
0x1728   :  { %v3941_v41 = vmul.f32 0.03125, %v3939_v43 }
0x172a   :  { %v3943_v19 = vadd.f32 1e-05, %v3941_v41 }
0x172c   :  { %5143 = vrsqrt.f32 %v3943_v19 }
0x1731   :  { %v5142_v44 = vpop.eup %5141 }
0x1732   :  { %v3951_v46 = vmul.f32 %v5142_v44, %v3925_v12 }
0x1734   :  { %v3959_v55 = vmul.f32 %v4308_v50, %v3951_v46 }
0x1736   :  { %v5144_v53 = vpop.eup %5143  ;;  %v3967_v62 = vadd.f32 %v4309_v18, %v3959_v55 }
0x1737   :  { %v3948_v54 = vrot.slane %v5144_v53, 1 }
0x1738   :  { %v4003_v0 = vrot.slane %v3967_v62, 7 }
0x1739   :  { %v3952_v56 = vmul.f32 %v3948_v54, %v3926_v15 }
0x173b   :  { %v3960_v57 = vmul.f32 %v4308_v50, %v3952_v56 }
0x173d   :  { %v3968_v63 = vadd.f32 %v4309_v18, %v3960_v57 }
0x173f   :  { %v4004_v1 = vrot.slane %v3968_v63, 6 }
0x1741   :  { %v4006_v3 = vsel %vm4005_vm13, %v4004_v1, %v4003_v0 }
0x1742   :  { %4550 = vmatprep.mubr.msk.f32.mxu0 %vm190_vm4, %v4006_v3 }
0x1743   :  { %4551 = vmatmul.mubr.msk.f32.vlgmr.msra.gmra.mrb[38].mxu0 %vm190_vm4, %v4006_v3 }
0x1816   :  { %v4171_v4 = vpop.f32.mrb[38].mxu0 }
0x1817   :  { %v4173_v5 = vpop.f32.mrb[39].mxu0 }
0x1818   :  { %v4178_v47 = vcombine.low %v4171_v4, %v4173_v5 }
0x181a   :  { %4343 = vst.sshfl [vmem:[%s6218_s17] sm:$0x33 pattern:$0x76325410] %v4178_v47 }

</bundles_post_ra>
